<compile_context>
chip_gen: v5e
topology: v5e:2x2
jax: 0.10.0
libtpu: 0.0.40
codegen_flags: <defaults>
</compile_context>

<pallas_src>
from functools import partial

import jax
import jax.numpy as jnp
from jax.experimental import pallas as pl
from jax.experimental.pallas import tpu as pltpu


# ------------------------------- helpers -----------------------------------

def _round_up(n, m):
    return ((n + m - 1) // m) * m


def _padded_bytes(shape, itemsize):
    """VMEM footprint of an array: last two dims padded to (8, 128) tiles."""
    s = list(shape)
    if len(s) == 1:
        s = [1] + s
    s[-1] = _round_up(s[-1], 128)
    s[-2] = _round_up(s[-2], 8)
    n = 1
    for d in s:
        n *= d
    return n * itemsize


def _best_unroll(n, candidates):
    for c in candidates:
        if n % c == 0:
            return c
    return 1


def _unrolled_fori(n, unroll, body, init):
    """fori_loop over range(n) with manual partial unrolling (unroll | n)."""
    def outer(i, carry):
        for j in range(unroll):
            carry = body(i * unroll + j, carry)
        return carry
    return jax.lax.fori_loop(0, n // unroll, outer, init)


def _tpu_info():
    """(vmem_capacity_bytes, num_tensorcores_per_chip) with safe fallbacks."""
    vmem_cap = 64 << 20                        # conservative default (v7x per-TC)
    try:
        vmem_cap = int(pltpu.get_tpu_info().vmem_capacity_bytes)
    except Exception:
        pass
    num_tc = 1
    try:
        kind = jax.devices()[0].device_kind.lower()
        if "v7" in kind or "7x" in kind:
            num_tc = 2
    except Exception:
        pass
    return vmem_cap, num_tc


def _pick_batch_block(B_pad, num_tc):
    """Largest sublane-aligned divisor of B_pad (<= 256). On multi-TC chips keep
    at least `num_tc` batch blocks so the 'parallel' axis feeds every core."""
    cap = 256
    cands = [d for d in range(8, min(B_pad, cap) + 1, 8) if B_pad % d == 0]
    if not cands:
        cands = [B_pad]
    if num_tc > 1 and B_pad >= 8 * num_tc:
        multi = [d for d in cands if B_pad // d >= num_tc]
        if multi:
            cands = multi
    return max(cands)


def _pick_time_block(T, per_t_bytes, fixed_bytes, vmem_cap):
    """Largest time block whose Tt-proportional VMEM (x + logits double buffers +
    hseq scratch) fits a generation-aware budget. Prefers divisors of T; if no
    reasonable divisor exists, T is padded (kernel masks the h update)."""
    budget = max(min(vmem_cap // 3, vmem_cap - fixed_bytes - (8 << 20)), 1 << 20)
    max_tt = max(1, budget // max(per_t_bytes, 1))
    target = min(max_tt, T)
    best = 1
    for tt in range(1, target + 1):
        if T % tt == 0:
            best = tt
    if best * 2 >= target or best == T:
        return best, T                          # good divisor -> no padding
    return target, _round_up(T, target)         # pad T; mask h updates in-kernel


def _pick_unroll(Tt, Bt, Hp):
    """Phase-2 unroll, co-tuned with (Bt, Hp) tile size to limit vreg pressure."""
    tile_vregs = (Bt * Hp * 4) // 4096          # one live (Bt, Hp) f32 tile
    if tile_vregs <= 8:
        cands = (8, 4, 2, 1)
    elif tile_vregs <= 16:
        cands = (4, 2, 1)
    else:
        cands = (2, 1)
    return _best_unroll(Tt, cands)


# ----------------------------- Pallas kernel --------------------------------

def rnn_fused_kernel(x_ref, h0_ref, wih_ref, whh_ref, b_ref, wfc_ref, bfc_ref,
                     logits_ref, hN_ref, hseq_ref, *, t_valid, unroll):
    """Fused forward for one (batch-block, time-block) grid step.

      x_ref:      (Tt, Bt, D)    time-major input block (mxu dtype)
      h0_ref:     (Bt, Hp)       initial hidden state (f32)
      wih_ref:    (D,  Hp)       W_ih.T, zero-padded to Hp lanes
      whh_ref:    (Hp, Hp)       W_hh.T, zero-padded
      b_ref:      (1,  Hp)       b_ih + b_hh (f32)
      wfc_ref:    (Hp, Np)       concat of FC heads' W.T, zero-padded
      bfc_ref:    (1,  Np)       concat of FC biases (f32)
      logits_ref: (Tt, Bt, Np)   fused FC logits block (f32)
      hN_ref:     (Bt, Hp)       final hidden state; constant block index along
                                 the time axis -> VMEM-resident carry
      hseq_ref:   (Tt*Bt, Hp)    scratch: x-projection, overwritten with h_t
    """
    t_blk = pl.program_id(1)
    Tt, Bt, D = x_ref.shape
    Hp = whh_ref.shape[0]
    Np = wfc_ref.shape[1]
    mxu_dtype = whh_ref.dtype

    @pl.when(t_blk == 0)
    def _init():
        hN_ref[...] = h0_ref[...]

    # ---- Phase 1: one big input projection, effective M = Tt*Bt -------------
    # Bt % 8 == 0 (wrapper pads batch) -> the reshape is a layout no-op.
    x2 = x_ref[...].reshape(Tt * Bt, D)
    hseq_ref[...] = (
        jnp.dot(x2, wih_ref[...], preferred_element_type=jnp.float32)
        + b_ref[...])

    # ---- Phase 2: serial tanh recurrence (the only serial part) -------------
    def step(t, h):
        row = pl.multiple_of(t * Bt, Bt)
        pre = hseq_ref[pl.ds(row, Bt), :] + jnp.dot(
            h.astype(mxu_dtype), whh_ref[...],
            preferred_element_type=jnp.float32)
        h_new = jnp.tanh(pre)
        if t_valid is not None:                 # only when T was padded
            h_new = jnp.where(t_blk * Tt + t < t_valid, h_new, h)
        hseq_ref[pl.ds(row, Bt), :] = h_new     # overwrite consumed projection
        return h_new

    hN_ref[...] = _unrolled_fori(Tt, unroll, step, hN_ref[...])

    # ---- Phase 3: all FC heads in one big matmul ----------------------------
    logits = (
        jnp.dot(hseq_ref[...].astype(mxu_dtype), wfc_ref[...],
                preferred_element_type=jnp.float32)
        + bfc_ref[...])
    logits_ref[...] = logits.reshape(Tt, Bt, Np)

    # TODO(synk): optional one-block-lookahead of phase 1 for time-block t+1
    # while running the serial recurrence of block t (deeper pipelining).


# ------------------------------ JAX wrapper ---------------------------------

@partial(jax.jit, static_argnames=("Tt", "Bt", "t_valid", "unroll",
                                   "vmem_limit", "single_buffer_weights"))
def _rnn_forward(x_tm, h0_p, wih_p, whh_p, b_p, wfc_p, bfc_p, *,
                 Tt, Bt, t_valid, unroll, vmem_limit, single_buffer_weights):
    T_pad, B_pad, D = x_tm.shape
    Hp = whh_p.shape[0]
    Np = wfc_p.shape[1]
    grid = (B_pad // Bt, T_pad // Tt)

    def const_spec(shape):
        # Constant block index -> single-buffer to halve the VMEM footprint.
        if single_buffer_weights:
            return pl.BlockSpec(shape, lambda b, t: (0, 0),
                                pipeline_mode=pl.Buffered(1))
        return pl.BlockSpec(shape, lambda b, t: (0, 0))

    kernel = partial(rnn_fused_kernel, t_valid=t_valid, unroll=unroll)

    return pl.pallas_call(
        kernel,
        out_shape=(jax.ShapeDtypeStruct((T_pad, B_pad, Np), jnp.float32),
                   jax.ShapeDtypeStruct((B_pad, Hp), jnp.float32)),
        grid_spec=pltpu.PrefetchScalarGridSpec(
            num_scalar_prefetch=0,
            grid=grid,
            in_specs=[
                pl.BlockSpec((Tt, Bt, D), lambda b, t: (t, b, 0)),    # x
                pl.BlockSpec((Bt, Hp), lambda b, t: (b, 0)),           # h0
                const_spec((D, Hp)),                                   # W_ih.T
                const_spec((Hp, Hp)),                                  # W_hh.T
                const_spec((1, Hp)),                                   # b_ih+b_hh
                const_spec((Hp, Np)),                                  # FC weights
                const_spec((1, Np)),                                   # FC biases
            ],
            out_specs=(
                pl.BlockSpec((Tt, Bt, Np), lambda b, t: (t, b, 0)),    # logits
                pl.BlockSpec((Bt, Hp), lambda b, t: (b, 0)),           # hN (carry)
            ),
            scratch_shapes=[pltpu.VMEM((Tt * Bt, Hp), jnp.float32)],
        ),
        compiler_params=pltpu.CompilerParams(
            dimension_semantics=("parallel", "arbitrary"),
            vmem_limit_bytes=int(vmem_limit),
        ),
    )(x_tm, h0_p, wih_p, whh_p, b_p, wfc_p, bfc_p)


_SINGLE_BUFFER_OK = None


def _forward_with_fallback(*args, **kw):
    """Try single-buffered constant operands; fall back if unsupported."""
    global _SINGLE_BUFFER_OK
    if _SINGLE_BUFFER_OK is None:
        try:
            out = _rnn_forward(*args, single_buffer_weights=True, **kw)
            _SINGLE_BUFFER_OK = True
            return out
        except Exception:
            _SINGLE_BUFFER_OK = False
    return _rnn_forward(*args, single_buffer_weights=_SINGLE_BUFFER_OK, **kw)


class RNNModelPallas:
    """Mirrors RNNModel(input_size, hidden_size, num_classes).forward."""

    def __init__(self, input_size, hidden_size, num_classes, key,
                 mxu_dtype=jnp.bfloat16):
        self.input_size = input_size
        self.hidden_size = hidden_size
        self.num_classes = list(num_classes)
        self.mxu_dtype = mxu_dtype

        k = 1.0 / float(hidden_size) ** 0.5
        keys = jax.random.split(key, 4 + 2 * len(self.num_classes))

        def unif(kk, shape, bound):
            return jax.random.uniform(kk, shape, jnp.float32, -bound, bound)

        # nn.RNN parameters (PyTorch shapes): W_ih (H, D), W_hh (H, H), b_* (H,)
        self.w_ih = unif(keys[0], (hidden_size, input_size), k)
        self.w_hh = unif(keys[1], (hidden_size, hidden_size), k)
        self.b_ih = unif(keys[2], (hidden_size,), k)
        self.b_hh = unif(keys[3], (hidden_size,), k)

        # nn.Linear heads: W (n, H), b (n,)
        self.fc_w, self.fc_b = [], []
        for i, n in enumerate(self.num_classes):
            self.fc_w.append(unif(keys[4 + 2 * i], (n, hidden_size), k))
            self.fc_b.append(unif(keys[5 + 2 * i], (n,), k))

        # --- padded / pre-transposed kernel parameters (lane-dense: 128) -----
        H, D = hidden_size, input_size
        Hp = _round_up(H, 128)
        Nsum = sum(self.num_classes)
        Np = _round_up(Nsum, 128)
        self.Hp, self.Np, self.Nsum = Hp, Np, Nsum

        self.wih_p = jnp.pad(self.w_ih.T, ((0, 0), (0, Hp - H))).astype(mxu_dtype)
        self.whh_p = jnp.pad(self.w_hh.T, ((0, Hp - H), (0, Hp - H))).astype(mxu_dtype)
        self.b_p = jnp.pad(self.b_ih + self.b_hh, (0, Hp - H))[None, :].astype(jnp.float32)

        w_cat = jnp.concatenate([w.T for w in self.fc_w], axis=1)     # (H, Nsum)
        b_cat = jnp.concatenate(self.fc_b, axis=0)                    # (Nsum,)
        self.wfc_p = jnp.pad(w_cat, ((0, Hp - H), (0, Np - Nsum))).astype(mxu_dtype)
        self.bfc_p = jnp.pad(b_cat, (0, Np - Nsum))[None, :].astype(jnp.float32)

    def __call__(self, x, hidden=None):
        B, T, D = x.shape
        assert D == self.input_size
        H, Hp, Np, Nsum = self.hidden_size, self.Hp, self.Np, self.Nsum

        # ------- generation-aware tiling --------------------------------
        vmem_cap, num_tc = _tpu_info()
        B_pad = _round_up(B, 8)                     # sublane-aligned batch
        Bt = _pick_batch_block(B_pad, num_tc)

        x_it = jnp.dtype(self.mxu_dtype).itemsize
        # Tt-proportional VMEM: double-buffered x & logits blocks + hseq scratch.
        per_t = (2 * _padded_bytes((1, Bt, D), x_it)
                 + 2 * _padded_bytes((1, Bt, Np), 4)
                 + _padded_bytes((Bt, Hp), 4))
        # Tt-independent VMEM: weights/biases + h0/hN carries.
        fixed = (_padded_bytes((D, Hp), x_it) + _padded_bytes((Hp, Hp), x_it)
                 + _padded_bytes((Hp, Np), x_it)
                 + _padded_bytes((1, Hp), 4) + _padded_bytes((1, Np), 4)
                 + 4 * _padded_bytes((Bt, Hp), 4))
        Tt, T_pad = _pick_time_block(T, per_t, fixed, vmem_cap)
        unroll = _pick_unroll(Tt, Bt, Hp)

        est = fixed + Tt * per_t
        vmem_limit = int(min(max(est + (est >> 1), 16 << 20),
                             int(vmem_cap * 0.85)))

        # ------- inputs: time-major, padded batch / time ----------------
        x_tm = jnp.transpose(x, (1, 0, 2)).astype(self.mxu_dtype)   # (T, B, D)
        if B_pad != B or T_pad != T:
            x_tm = jnp.pad(x_tm, ((0, T_pad - T), (0, B_pad - B), (0, 0)))
        t_valid = T if T_pad != T else None

        if hidden is None:                        # PyTorch default: zeros
            h0_p = jnp.zeros((B_pad, Hp), jnp.float32)
        else:
            h0 = jnp.asarray(hidden)[0].astype(jnp.float32)          # (B, H)
            h0_p = jnp.pad(h0, ((0, B_pad - B), (0, Hp - H)))

        logits_tm, hN_p = _forward_with_fallback(
            x_tm, h0_p, self.wih_p, self.whh_p, self.b_p, self.wfc_p, self.bfc_p,
            Tt=Tt, Bt=Bt, t_valid=t_valid, unroll=unroll, vmem_limit=vmem_limit)

        # Slice time/batch/class padding BEFORE the (T,B)->(B,T) transpose so
        # only the real Nsum columns round-trip HBM.
        logits = jnp.transpose(logits_tm[:T, :B, :Nsum], (1, 0, 2))   # (B, T, Nsum)
        outputs, off = [], 0
        for n in self.num_classes:
            outputs.append(logits[:, :, off:off + n])
            off += n

        hN = hN_p[:B, :H]
        return outputs, hN[None]                                      # (1, B, H)

        # TODO(synk): packed / variable-length sequences (pack_padded_sequence)
        # and the fit() training loop are out of scope for this forward kernel.


# ----------------------------- reference check ------------------------------

def reference_forward(model, x, hidden=None):
    B, T, _ = x.shape
    H = model.hidden_size
    h = jnp.zeros((B, H), jnp.float32) if hidden is None else jnp.asarray(hidden)[0]

    def step(h, x_t):
        h_new = jnp.tanh(x_t @ model.w_ih.T + model.b_ih
                         + h @ model.w_hh.T + model.b_hh)
        return h_new, h_new

    hN, out_tm = jax.lax.scan(step, h, jnp.transpose(x, (1, 0, 2)))
    out = jnp.transpose(out_tm, (1, 0, 2))
    heads = [out @ w.T + b for w, b in zip(model.fc_w, model.fc_b)]
    return heads, hN[None]


# ---------------------------------- main -------------------------------------

if __name__ == "__main__":
    key = jax.random.PRNGKey(0)
    k_param, k_x = jax.random.split(key)

    B, T = 2, 8
    input_size, hidden_size = 4, 32
    num_classes = [5, 7]

    x = jax.random.normal(k_x, (B, T, input_size), jnp.float32)

    # (1) f32 MXU operands: strict correctness check against the JAX reference.
    model_f32 = RNNModelPallas(input_size, hidden_size, num_classes, k_param,
                               mxu_dtype=jnp.float32)
    outputs, hidden = model_f32(x, hidden=None)
    jax.block_until_ready(outputs)
    jax.block_until_ready(hidden)

    ref_outputs, ref_hidden = reference_forward(model_f32, x, hidden=None)
    for o, r in zip(outputs, ref_outputs):
        assert o.shape == r.shape
        assert jnp.allclose(o, r, atol=1e-4, rtol=1e-4)
    assert jnp.allclose(hidden, ref_hidden, atol=1e-4, rtol=1e-4)

    # (2) bf16 MXU operands (perf config), f32 accumulation / carried state:
    #     validate against the f32 reference with loose tolerance.
    model_bf16 = RNNModelPallas(input_size, hidden_size, num_classes, k_param,
                                mxu_dtype=jnp.bfloat16)
    outputs_b, hidden_b = model_bf16(x, hidden=None)
    jax.block_until_ready(outputs_b)
    jax.block_until_ready(hidden_b)
    for o, r in zip(outputs_b, ref_outputs):
        assert o.shape == r.shape
        assert jnp.allclose(o, r, atol=5e-2, rtol=5e-2)
    assert jnp.allclose(hidden_b, ref_hidden, atol=5e-2, rtol=5e-2)

    print("KERNEL_OK")
</pallas_src>

<mosaic_0001>
module attributes {stable_mosaic.version = 11 : i64} {
  func.func @rnn_fused_kernel(%arg0: i32, %arg1: i32, %arg2: memref<8x8x4xf32, #tpu.memory_space<vmem>>, %arg3: memref<8x128xf32, #tpu.memory_space<vmem>>, %arg4: memref<4x128xf32, #tpu.memory_space<vmem>>, %arg5: memref<128x128xf32, #tpu.memory_space<vmem>>, %arg6: memref<1x128xf32, #tpu.memory_space<vmem>>, %arg7: memref<128x128xf32, #tpu.memory_space<vmem>>, %arg8: memref<1x128xf32, #tpu.memory_space<vmem>>, %arg9: memref<8x8x128xf32, #tpu.memory_space<vmem>>, %arg10: memref<8x128xf32, #tpu.memory_space<vmem>>, %arg11: memref<64x128xf32, #tpu.memory_space<vmem>>) attributes {dimension_semantics = [#tpu.dimension_semantics<parallel>, #tpu.dimension_semantics<arbitrary>], iteration_bounds = array<i64: 1, 1>, scalar_prefetch = 0 : i64, scratch_operands = 1 : i64, tpu.core_type = #tpu.core_type<tc>, window_params = [{transform_indices = @transform_0, window_bounds = array<i64: 8, 8, 4>}, {transform_indices = @transform_1, window_bounds = array<i64: 8, 128>}, {pipeline_mode = #tpu.pipeline_mode<synchronous>, transform_indices = @transform_2, window_bounds = array<i64: 4, 128>}, {pipeline_mode = #tpu.pipeline_mode<synchronous>, transform_indices = @transform_3, window_bounds = array<i64: 128, 128>}, {pipeline_mode = #tpu.pipeline_mode<synchronous>, transform_indices = @transform_4, window_bounds = array<i64: 1, 128>}, {pipeline_mode = #tpu.pipeline_mode<synchronous>, transform_indices = @transform_5, window_bounds = array<i64: 128, 128>}, {pipeline_mode = #tpu.pipeline_mode<synchronous>, transform_indices = @transform_6, window_bounds = array<i64: 1, 128>}, {transform_indices = @transform_7, window_bounds = array<i64: 8, 8, 128>}, {transform_indices = @transform_8, window_bounds = array<i64: 8, 128>}]} {
    %c0_i32 = arith.constant 0 : i32
    %0 = arith.cmpi eq, %arg1, %c0_i32 : i32
    %1 = arith.extui %0 : i1 to i32
    %c0_i32_0 = arith.constant 0 : i32
    %2 = arith.cmpi ne, %1, %c0_i32_0 : i32
    scf.if %2 {
      %c0_81 = arith.constant 0 : index
      %c0_82 = arith.constant 0 : index
      %117 = vector.load %arg3[%c0_81, %c0_82] : memref<8x128xf32, #tpu.memory_space<vmem>>, vector<8x128xf32>
      %c0_83 = arith.constant 0 : index
      %c0_84 = arith.constant 0 : index
      %118 = vector.load %arg10[%c0_83, %c0_84] : memref<8x128xf32, #tpu.memory_space<vmem>>, vector<8x128xf32>
      tpu.vector_store %arg10[%c0_83, %c0_84], %117 {strides = array<i32>} : memref<8x128xf32, #tpu.memory_space<vmem>>, vector<8x128xf32>,
    } else {
    }
    %c0 = arith.constant 0 : index
    %c0_1 = arith.constant 0 : index
    %c0_2 = arith.constant 0 : index
    %3 = vector.load %arg2[%c0, %c0_1, %c0_2] : memref<8x8x4xf32, #tpu.memory_space<vmem>>, vector<8x8x4xf32>
    %4 = vector.shape_cast %3 : vector<8x8x4xf32> to vector<64x4xf32>
    %c0_3 = arith.constant 0 : index
    %c0_4 = arith.constant 0 : index
    %5 = vector.load %arg4[%c0_3, %c0_4] : memref<4x128xf32, #tpu.memory_space<vmem>>, vector<4x128xf32>
    %cst = arith.constant dense<0.000000e+00> : vector<64x128xf32>
    %6 = tpu.matmul %4, %5, %cst {dimension_numbers = #tpu.dot_dimension_numbers<[1], [0], [0], [1], [0, 0, 1, 1], [], []>} : vector<64x4xf32>, vector<4x128xf32>, vector<64x128xf32> -> vector<64x128xf32>
    %c0_5 = arith.constant 0 : index
    %c0_6 = arith.constant 0 : index
    %7 = vector.load %arg6[%c0_5, %c0_6] : memref<1x128xf32, #tpu.memory_space<vmem>>, vector<1x128xf32>
    %8 = vector.broadcast %7 : vector<1x128xf32> to vector<64x128xf32>
    %9 = arith.addf %6, %8 : vector<64x128xf32>
    %c0_7 = arith.constant 0 : index
    %c0_8 = arith.constant 0 : index
    %10 = vector.load %arg11[%c0_7, %c0_8] : memref<64x128xf32, #tpu.memory_space<vmem>>, vector<64x128xf32>
    tpu.vector_store %arg11[%c0_7, %c0_8], %9 {strides = array<i32>} : memref<64x128xf32, #tpu.memory_space<vmem>>, vector<64x128xf32>,
    %c0_9 = arith.constant 0 : index
    %c0_10 = arith.constant 0 : index
    %11 = vector.load %arg10[%c0_9, %c0_10] : memref<8x128xf32, #tpu.memory_space<vmem>>, vector<8x128xf32>
    %c0_i32_11 = arith.constant 0 : i32
    %c8_i32 = arith.constant 8 : i32
    %12 = arith.muli %c0_i32_11, %c8_i32 : i32
    %c0_i32_12 = arith.constant 0 : i32
    %13 = arith.addi %12, %c0_i32_12 : i32
    %c8_i32_13 = arith.constant 8 : i32
    %14 = arith.muli %13, %c8_i32_13 : i32
    %15 = tpu.assume_multiple %14, 8 : i32
    %16 = arith.index_cast %15 : i32 to index
    %c0_14 = arith.constant 0 : index
    %17 = vector.load %arg11[%16, %c0_14] : memref<64x128xf32, #tpu.memory_space<vmem>>, vector<8x128xf32>
    %c0_15 = arith.constant 0 : index
    %c0_16 = arith.constant 0 : index
    %18 = vector.load %arg5[%c0_15, %c0_16] : memref<128x128xf32, #tpu.memory_space<vmem>>, vector<128x128xf32>
    %cst_17 = arith.constant dense<0.000000e+00> : vector<8x128xf32>
    %19 = tpu.matmul %11, %18, %cst_17 {dimension_numbers = #tpu.dot_dimension_numbers<[1], [0], [0], [1], [0, 0, 1, 1], [], []>} : vector<8x128xf32>, vector<128x128xf32>, vector<8x128xf32> -> vector<8x128xf32>
    %20 = arith.addf %17, %19 : vector<8x128xf32>
    %21 = math.tanh %20 : vector<8x128xf32>
    %22 = arith.index_cast %15 : i32 to index
    %c0_18 = arith.constant 0 : index
    %23 = vector.load %arg11[%22, %c0_18] : memref<64x128xf32, #tpu.memory_space<vmem>>, vector<8x128xf32>
    tpu.vector_store %arg11[%22, %c0_18], %21 {strides = array<i32>} : memref<64x128xf32, #tpu.memory_space<vmem>>, vector<8x128xf32>,
    %c8_i32_19 = arith.constant 8 : i32
    %24 = arith.muli %c0_i32_11, %c8_i32_19 : i32
    %c1_i32 = arith.constant 1 : i32
    %25 = arith.addi %24, %c1_i32 : i32
    %c8_i32_20 = arith.constant 8 : i32
    %26 = arith.muli %25, %c8_i32_20 : i32
    %27 = tpu.assume_multiple %26, 8 : i32
    %28 = arith.index_cast %27 : i32 to index
    %c0_21 = arith.constant 0 : index
    %29 = vector.load %arg11[%28, %c0_21] : memref<64x128xf32, #tpu.memory_space<vmem>>, vector<8x128xf32>
    %c0_22 = arith.constant 0 : index
    %c0_23 = arith.constant 0 : index
    %30 = vector.load %arg5[%c0_22, %c0_23] : memref<128x128xf32, #tpu.memory_space<vmem>>, vector<128x128xf32>
    %cst_24 = arith.constant dense<0.000000e+00> : vector<8x128xf32>
    %31 = tpu.matmul %21, %30, %cst_24 {dimension_numbers = #tpu.dot_dimension_numbers<[1], [0], [0], [1], [0, 0, 1, 1], [], []>} : vector<8x128xf32>, vector<128x128xf32>, vector<8x128xf32> -> vector<8x128xf32>
    %32 = arith.addf %29, %31 : vector<8x128xf32>
    %33 = math.tanh %32 : vector<8x128xf32>
    %34 = arith.index_cast %27 : i32 to index
    %c0_25 = arith.constant 0 : index
    %35 = vector.load %arg11[%34, %c0_25] : memref<64x128xf32, #tpu.memory_space<vmem>>, vector<8x128xf32>
    tpu.vector_store %arg11[%34, %c0_25], %33 {strides = array<i32>} : memref<64x128xf32, #tpu.memory_space<vmem>>, vector<8x128xf32>,
    %c8_i32_26 = arith.constant 8 : i32
    %36 = arith.muli %c0_i32_11, %c8_i32_26 : i32
    %c2_i32 = arith.constant 2 : i32
    %37 = arith.addi %36, %c2_i32 : i32
    %c8_i32_27 = arith.constant 8 : i32
    %38 = arith.muli %37, %c8_i32_27 : i32
    %39 = tpu.assume_multiple %38, 8 : i32
    %40 = arith.index_cast %39 : i32 to index
    %c0_28 = arith.constant 0 : index
    %41 = vector.load %arg11[%40, %c0_28] : memref<64x128xf32, #tpu.memory_space<vmem>>, vector<8x128xf32>
    %c0_29 = arith.constant 0 : index
    %c0_30 = arith.constant 0 : index
    %42 = vector.load %arg5[%c0_29, %c0_30] : memref<128x128xf32, #tpu.memory_space<vmem>>, vector<128x128xf32>
    %cst_31 = arith.constant dense<0.000000e+00> : vector<8x128xf32>
    %43 = tpu.matmul %33, %42, %cst_31 {dimension_numbers = #tpu.dot_dimension_numbers<[1], [0], [0], [1], [0, 0, 1, 1], [], []>} : vector<8x128xf32>, vector<128x128xf32>, vector<8x128xf32> -> vector<8x128xf32>
    %44 = arith.addf %41, %43 : vector<8x128xf32>
    %45 = math.tanh %44 : vector<8x128xf32>
    %46 = arith.index_cast %39 : i32 to index
    %c0_32 = arith.constant 0 : index
    %47 = vector.load %arg11[%46, %c0_32] : memref<64x128xf32, #tpu.memory_space<vmem>>, vector<8x128xf32>
    tpu.vector_store %arg11[%46, %c0_32], %45 {strides = array<i32>} : memref<64x128xf32, #tpu.memory_space<vmem>>, vector<8x128xf32>,
    %c8_i32_33 = arith.constant 8 : i32
    %48 = arith.muli %c0_i32_11, %c8_i32_33 : i32
    %c3_i32 = arith.constant 3 : i32
    %49 = arith.addi %48, %c3_i32 : i32
    %c8_i32_34 = arith.constant 8 : i32
    %50 = arith.muli %49, %c8_i32_34 : i32
    %51 = tpu.assume_multiple %50, 8 : i32
    %52 = arith.index_cast %51 : i32 to index
    %c0_35 = arith.constant 0 : index
    %53 = vector.load %arg11[%52, %c0_35] : memref<64x128xf32, #tpu.memory_space<vmem>>, vector<8x128xf32>
    %c0_36 = arith.constant 0 : index
    %c0_37 = arith.constant 0 : index
    %54 = vector.load %arg5[%c0_36, %c0_37] : memref<128x128xf32, #tpu.memory_space<vmem>>, vector<128x128xf32>
    %cst_38 = arith.constant dense<0.000000e+00> : vector<8x128xf32>
    %55 = tpu.matmul %45, %54, %cst_38 {dimension_numbers = #tpu.dot_dimension_numbers<[1], [0], [0], [1], [0, 0, 1, 1], [], []>} : vector<8x128xf32>, vector<128x128xf32>, vector<8x128xf32> -> vector<8x128xf32>
    %56 = arith.addf %53, %55 : vector<8x128xf32>
    %57 = math.tanh %56 : vector<8x128xf32>
    %58 = arith.index_cast %51 : i32 to index
    %c0_39 = arith.constant 0 : index
    %59 = vector.load %arg11[%58, %c0_39] : memref<64x128xf32, #tpu.memory_space<vmem>>, vector<8x128xf32>
    tpu.vector_store %arg11[%58, %c0_39], %57 {strides = array<i32>} : memref<64x128xf32, #tpu.memory_space<vmem>>, vector<8x128xf32>,
    %c8_i32_40 = arith.constant 8 : i32
    %60 = arith.muli %c0_i32_11, %c8_i32_40 : i32
    %c4_i32 = arith.constant 4 : i32
    %61 = arith.addi %60, %c4_i32 : i32
    %c8_i32_41 = arith.constant 8 : i32
    %62 = arith.muli %61, %c8_i32_41 : i32
    %63 = tpu.assume_multiple %62, 8 : i32
    %64 = arith.index_cast %63 : i32 to index
    %c0_42 = arith.constant 0 : index
    %65 = vector.load %arg11[%64, %c0_42] : memref<64x128xf32, #tpu.memory_space<vmem>>, vector<8x128xf32>
    %c0_43 = arith.constant 0 : index
    %c0_44 = arith.constant 0 : index
    %66 = vector.load %arg5[%c0_43, %c0_44] : memref<128x128xf32, #tpu.memory_space<vmem>>, vector<128x128xf32>
    %cst_45 = arith.constant dense<0.000000e+00> : vector<8x128xf32>
    %67 = tpu.matmul %57, %66, %cst_45 {dimension_numbers = #tpu.dot_dimension_numbers<[1], [0], [0], [1], [0, 0, 1, 1], [], []>} : vector<8x128xf32>, vector<128x128xf32>, vector<8x128xf32> -> vector<8x128xf32>
    %68 = arith.addf %65, %67 : vector<8x128xf32>
    %69 = math.tanh %68 : vector<8x128xf32>
    %70 = arith.index_cast %63 : i32 to index
    %c0_46 = arith.constant 0 : index
    %71 = vector.load %arg11[%70, %c0_46] : memref<64x128xf32, #tpu.memory_space<vmem>>, vector<8x128xf32>
    tpu.vector_store %arg11[%70, %c0_46], %69 {strides = array<i32>} : memref<64x128xf32, #tpu.memory_space<vmem>>, vector<8x128xf32>,
    %c8_i32_47 = arith.constant 8 : i32
    %72 = arith.muli %c0_i32_11, %c8_i32_47 : i32
    %c5_i32 = arith.constant 5 : i32
    %73 = arith.addi %72, %c5_i32 : i32
    %c8_i32_48 = arith.constant 8 : i32
    %74 = arith.muli %73, %c8_i32_48 : i32
    %75 = tpu.assume_multiple %74, 8 : i32
    %76 = arith.index_cast %75 : i32 to index
    %c0_49 = arith.constant 0 : index
    %77 = vector.load %arg11[%76, %c0_49] : memref<64x128xf32, #tpu.memory_space<vmem>>, vector<8x128xf32>
    %c0_50 = arith.constant 0 : index
    %c0_51 = arith.constant 0 : index
    %78 = vector.load %arg5[%c0_50, %c0_51] : memref<128x128xf32, #tpu.memory_space<vmem>>, vector<128x128xf32>
    %cst_52 = arith.constant dense<0.000000e+00> : vector<8x128xf32>
    %79 = tpu.matmul %69, %78, %cst_52 {dimension_numbers = #tpu.dot_dimension_numbers<[1], [0], [0], [1], [0, 0, 1, 1], [], []>} : vector<8x128xf32>, vector<128x128xf32>, vector<8x128xf32> -> vector<8x128xf32>
    %80 = arith.addf %77, %79 : vector<8x128xf32>
    %81 = math.tanh %80 : vector<8x128xf32>
    %82 = arith.index_cast %75 : i32 to index
    %c0_53 = arith.constant 0 : index
    %83 = vector.load %arg11[%82, %c0_53] : memref<64x128xf32, #tpu.memory_space<vmem>>, vector<8x128xf32>
    tpu.vector_store %arg11[%82, %c0_53], %81 {strides = array<i32>} : memref<64x128xf32, #tpu.memory_space<vmem>>, vector<8x128xf32>,
    %c8_i32_54 = arith.constant 8 : i32
    %84 = arith.muli %c0_i32_11, %c8_i32_54 : i32
    %c6_i32 = arith.constant 6 : i32
    %85 = arith.addi %84, %c6_i32 : i32
    %c8_i32_55 = arith.constant 8 : i32
    %86 = arith.muli %85, %c8_i32_55 : i32
    %87 = tpu.assume_multiple %86, 8 : i32
    %88 = arith.index_cast %87 : i32 to index
    %c0_56 = arith.constant 0 : index
    %89 = vector.load %arg11[%88, %c0_56] : memref<64x128xf32, #tpu.memory_space<vmem>>, vector<8x128xf32>
    %c0_57 = arith.constant 0 : index
    %c0_58 = arith.constant 0 : index
    %90 = vector.load %arg5[%c0_57, %c0_58] : memref<128x128xf32, #tpu.memory_space<vmem>>, vector<128x128xf32>
    %cst_59 = arith.constant dense<0.000000e+00> : vector<8x128xf32>
    %91 = tpu.matmul %81, %90, %cst_59 {dimension_numbers = #tpu.dot_dimension_numbers<[1], [0], [0], [1], [0, 0, 1, 1], [], []>} : vector<8x128xf32>, vector<128x128xf32>, vector<8x128xf32> -> vector<8x128xf32>
    %92 = arith.addf %89, %91 : vector<8x128xf32>
    %93 = math.tanh %92 : vector<8x128xf32>
    %94 = arith.index_cast %87 : i32 to index
    %c0_60 = arith.constant 0 : index
    %95 = vector.load %arg11[%94, %c0_60] : memref<64x128xf32, #tpu.memory_space<vmem>>, vector<8x128xf32>
    tpu.vector_store %arg11[%94, %c0_60], %93 {strides = array<i32>} : memref<64x128xf32, #tpu.memory_space<vmem>>, vector<8x128xf32>,
    %c8_i32_61 = arith.constant 8 : i32
    %96 = arith.muli %c0_i32_11, %c8_i32_61 : i32
    %c7_i32 = arith.constant 7 : i32
    %97 = arith.addi %96, %c7_i32 : i32
    %c8_i32_62 = arith.constant 8 : i32
    %98 = arith.muli %97, %c8_i32_62 : i32
    %99 = tpu.assume_multiple %98, 8 : i32
    %100 = arith.index_cast %99 : i32 to index
    %c0_63 = arith.constant 0 : index
    %101 = vector.load %arg11[%100, %c0_63] : memref<64x128xf32, #tpu.memory_space<vmem>>, vector<8x128xf32>
    %c0_64 = arith.constant 0 : index
    %c0_65 = arith.constant 0 : index
    %102 = vector.load %arg5[%c0_64, %c0_65] : memref<128x128xf32, #tpu.memory_space<vmem>>, vector<128x128xf32>
    %cst_66 = arith.constant dense<0.000000e+00> : vector<8x128xf32>
    %103 = tpu.matmul %93, %102, %cst_66 {dimension_numbers = #tpu.dot_dimension_numbers<[1], [0], [0], [1], [0, 0, 1, 1], [], []>} : vector<8x128xf32>, vector<128x128xf32>, vector<8x128xf32> -> vector<8x128xf32>
    %104 = arith.addf %101, %103 : vector<8x128xf32>
    %105 = math.tanh %104 : vector<8x128xf32>
    %106 = arith.index_cast %99 : i32 to index
    %c0_67 = arith.constant 0 : index
    %107 = vector.load %arg11[%106, %c0_67] : memref<64x128xf32, #tpu.memory_space<vmem>>, vector<8x128xf32>
    tpu.vector_store %arg11[%106, %c0_67], %105 {strides = array<i32>} : memref<64x128xf32, #tpu.memory_space<vmem>>, vector<8x128xf32>,
    %c1_i32_68 = arith.constant 1 : i32
    %c0_69 = arith.constant 0 : index
    %c0_70 = arith.constant 0 : index
    %108 = vector.load %arg10[%c0_69, %c0_70] : memref<8x128xf32, #tpu.memory_space<vmem>>, vector<8x128xf32>
    tpu.vector_store %arg10[%c0_69, %c0_70], %105 {strides = array<i32>} : memref<8x128xf32, #tpu.memory_space<vmem>>, vector<8x128xf32>,
    %c0_71 = arith.constant 0 : index
    %c0_72 = arith.constant 0 : index
    %109 = vector.load %arg11[%c0_71, %c0_72] : memref<64x128xf32, #tpu.memory_space<vmem>>, vector<64x128xf32>
    %c0_73 = arith.constant 0 : index
    %c0_74 = arith.constant 0 : index
    %110 = vector.load %arg7[%c0_73, %c0_74] : memref<128x128xf32, #tpu.memory_space<vmem>>, vector<128x128xf32>
    %cst_75 = arith.constant dense<0.000000e+00> : vector<64x128xf32>
    %111 = tpu.matmul %109, %110, %cst_75 {dimension_numbers = #tpu.dot_dimension_numbers<[1], [0], [0], [1], [0, 0, 1, 1], [], []>} : vector<64x128xf32>, vector<128x128xf32>, vector<64x128xf32> -> vector<64x128xf32>
    %c0_76 = arith.constant 0 : index
    %c0_77 = arith.constant 0 : index
    %112 = vector.load %arg8[%c0_76, %c0_77] : memref<1x128xf32, #tpu.memory_space<vmem>>, vector<1x128xf32>
    %113 = vector.broadcast %112 : vector<1x128xf32> to vector<64x128xf32>
    %114 = arith.addf %111, %113 : vector<64x128xf32>
    %115 = vector.shape_cast %114 : vector<64x128xf32> to vector<8x8x128xf32>
    %c0_78 = arith.constant 0 : index
    %c0_79 = arith.constant 0 : index
    %c0_80 = arith.constant 0 : index
    %116 = vector.load %arg9[%c0_78, %c0_79, %c0_80] : memref<8x8x128xf32, #tpu.memory_space<vmem>>, vector<8x8x128xf32>
    tpu.vector_store %arg9[%c0_78, %c0_79, %c0_80], %115 {strides = array<i32>} : memref<8x8x128xf32, #tpu.memory_space<vmem>>, vector<8x8x128xf32>,
    return
  }
  func.func @transform_0(%arg0: i32, %arg1: i32) -> (i32, i32, i32) {
    %c0_i32 = arith.constant 0 : i32
    %c0_i32_0 = arith.constant 0 : i32
    return %arg1, %arg0, %c0_i32 : i32, i32, i32
  }
  func.func @transform_1(%arg0: i32, %arg1: i32) -> (i32, i32) {
    %c0_i32 = arith.constant 0 : i32
    %c0_i32_0 = arith.constant 0 : i32
    return %arg0, %c0_i32 : i32, i32
  }
  func.func @transform_2(%arg0: i32, %arg1: i32) -> (i32, i32) {
    %c0_i32 = arith.constant 0 : i32
    %c0_i32_0 = arith.constant 0 : i32
    %c0_i32_1 = arith.constant 0 : i32
    return %c0_i32, %c0_i32_0 : i32, i32
  }
  func.func @transform_3(%arg0: i32, %arg1: i32) -> (i32, i32) {
    %c0_i32 = arith.constant 0 : i32
    %c0_i32_0 = arith.constant 0 : i32
    %c0_i32_1 = arith.constant 0 : i32
    return %c0_i32, %c0_i32_0 : i32, i32
  }
  func.func @transform_4(%arg0: i32, %arg1: i32) -> (i32, i32) {
    %c0_i32 = arith.constant 0 : i32
    %c0_i32_0 = arith.constant 0 : i32
    %c0_i32_1 = arith.constant 0 : i32
    return %c0_i32, %c0_i32_0 : i32, i32
  }
  func.func @transform_5(%arg0: i32, %arg1: i32) -> (i32, i32) {
    %c0_i32 = arith.constant 0 : i32
    %c0_i32_0 = arith.constant 0 : i32
    %c0_i32_1 = arith.constant 0 : i32
    return %c0_i32, %c0_i32_0 : i32, i32
  }
  func.func @transform_6(%arg0: i32, %arg1: i32) -> (i32, i32) {
    %c0_i32 = arith.constant 0 : i32
    %c0_i32_0 = arith.constant 0 : i32
    %c0_i32_1 = arith.constant 0 : i32
    return %c0_i32, %c0_i32_0 : i32, i32
  }
  func.func @transform_7(%arg0: i32, %arg1: i32) -> (i32, i32, i32) {
    %c0_i32 = arith.constant 0 : i32
    %c0_i32_0 = arith.constant 0 : i32
    return %arg1, %arg0, %c0_i32 : i32, i32, i32
  }
  func.func @transform_8(%arg0: i32, %arg1: i32) -> (i32, i32) {
    %c0_i32 = arith.constant 0 : i32
    %c0_i32_0 = arith.constant 0 : i32
    return %arg0, %c0_i32 : i32, i32
  }
}

module attributes {stable_mosaic.version = 11 : i64} {
  func.func @rnn_fused_kernel(%arg0: i32, %arg1: i32, %arg2: memref<8x8x4xf32, #tpu.memory_space<vmem>>, %arg3: memref<8x128xf32, #tpu.memory_space<vmem>>, %arg4: memref<4x128xf32, #tpu.memory_space<vmem>>, %arg5: memref<128x128xf32, #tpu.memory_space<vmem>>, %arg6: memref<1x128xf32, #tpu.memory_space<vmem>>, %arg7: memref<128x128xf32, #tpu.memory_space<vmem>>, %arg8: memref<1x128xf32, #tpu.memory_space<vmem>>, %arg9: memref<8x8x128xf32, #tpu.memory_space<vmem>>, %arg10: memref<8x128xf32, #tpu.memory_space<vmem>>, %arg11: memref<64x128xf32, #tpu.memory_space<vmem>>) attributes {dimension_semantics = [#tpu.dimension_semantics<parallel>, #tpu.dimension_semantics<arbitrary>], iteration_bounds = array<i64: 1, 1>, scalar_prefetch = 0 : i64, scratch_operands = 1 : i64, tpu.core_type = #tpu.core_type<tc>, window_params = [{transform_indices = @transform_0, window_bounds = array<i64: 8, 8, 4>}, {transform_indices = @transform_1, window_bounds = array<i64: 8, 128>}, {pipeline_mode = #tpu.pipeline_mode<synchronous>, transform_indices = @transform_2, window_bounds = array<i64: 4, 128>}, {pipeline_mode = #tpu.pipeline_mode<synchronous>, transform_indices = @transform_3, window_bounds = array<i64: 128, 128>}, {pipeline_mode = #tpu.pipeline_mode<synchronous>, transform_indices = @transform_4, window_bounds = array<i64: 1, 128>}, {pipeline_mode = #tpu.pipeline_mode<synchronous>, transform_indices = @transform_5, window_bounds = array<i64: 128, 128>}, {pipeline_mode = #tpu.pipeline_mode<synchronous>, transform_indices = @transform_6, window_bounds = array<i64: 1, 128>}, {transform_indices = @transform_7, window_bounds = array<i64: 8, 8, 128>}, {transform_indices = @transform_8, window_bounds = array<i64: 8, 128>}]} {
    %c0_i32 = arith.constant 0 : i32
    %0 = arith.cmpi eq, %arg1, %c0_i32 : i32
    %1 = arith.extui %0 : i1 to i32
    %c0_i32_0 = arith.constant 0 : i32
    %2 = arith.cmpi ne, %1, %c0_i32_0 : i32
    scf.if %2 {
      %c0_81 = arith.constant 0 : index
      %c0_82 = arith.constant 0 : index
      %117 = vector.load %arg3[%c0_81, %c0_82] : memref<8x128xf32, #tpu.memory_space<vmem>>, vector<8x128xf32>
      %c0_83 = arith.constant 0 : index
      %c0_84 = arith.constant 0 : index
      %118 = vector.load %arg10[%c0_83, %c0_84] : memref<8x128xf32, #tpu.memory_space<vmem>>, vector<8x128xf32>
      tpu.vector_store %arg10[%c0_83, %c0_84], %117 {strides = array<i32>} : memref<8x128xf32, #tpu.memory_space<vmem>>, vector<8x128xf32>,
    } else {
    }
    %c0 = arith.constant 0 : index
    %c0_1 = arith.constant 0 : index
    %c0_2 = arith.constant 0 : index
    %3 = vector.load %arg2[%c0, %c0_1, %c0_2] : memref<8x8x4xf32, #tpu.memory_space<vmem>>, vector<8x8x4xf32>
    %4 = vector.shape_cast %3 : vector<8x8x4xf32> to vector<64x4xf32>
    %c0_3 = arith.constant 0 : index
    %c0_4 = arith.constant 0 : index
    %5 = vector.load %arg4[%c0_3, %c0_4] : memref<4x128xf32, #tpu.memory_space<vmem>>, vector<4x128xf32>
    %cst = arith.constant dense<0.000000e+00> : vector<64x128xf32>
    %6 = tpu.matmul %4, %5, %cst {dimension_numbers = #tpu.dot_dimension_numbers<[1], [0], [0], [1], [0, 0, 1, 1], [], []>} : vector<64x4xf32>, vector<4x128xf32>, vector<64x128xf32> -> vector<64x128xf32>
    %c0_5 = arith.constant 0 : index
    %c0_6 = arith.constant 0 : index
    %7 = vector.load %arg6[%c0_5, %c0_6] : memref<1x128xf32, #tpu.memory_space<vmem>>, vector<1x128xf32>
    %8 = vector.broadcast %7 : vector<1x128xf32> to vector<64x128xf32>
    %9 = arith.addf %6, %8 : vector<64x128xf32>
    %c0_7 = arith.constant 0 : index
    %c0_8 = arith.constant 0 : index
    %10 = vector.load %arg11[%c0_7, %c0_8] : memref<64x128xf32, #tpu.memory_space<vmem>>, vector<64x128xf32>
    tpu.vector_store %arg11[%c0_7, %c0_8], %9 {strides = array<i32>} : memref<64x128xf32, #tpu.memory_space<vmem>>, vector<64x128xf32>,
    %c0_9 = arith.constant 0 : index
    %c0_10 = arith.constant 0 : index
    %11 = vector.load %arg10[%c0_9, %c0_10] : memref<8x128xf32, #tpu.memory_space<vmem>>, vector<8x128xf32>
    %c0_i32_11 = arith.constant 0 : i32
    %c8_i32 = arith.constant 8 : i32
    %12 = arith.muli %c0_i32_11, %c8_i32 : i32
    %c0_i32_12 = arith.constant 0 : i32
    %13 = arith.addi %12, %c0_i32_12 : i32
    %c8_i32_13 = arith.constant 8 : i32
    %14 = arith.muli %13, %c8_i32_13 : i32
    %15 = tpu.assume_multiple %14, 8 : i32
    %16 = arith.index_cast %15 : i32 to index
    %c0_14 = arith.constant 0 : index
    %17 = vector.load %arg11[%16, %c0_14] : memref<64x128xf32, #tpu.memory_space<vmem>>, vector<8x128xf32>
    %c0_15 = arith.constant 0 : index
    %c0_16 = arith.constant 0 : index
    %18 = vector.load %arg5[%c0_15, %c0_16] : memref<128x128xf32, #tpu.memory_space<vmem>>, vector<128x128xf32>
    %cst_17 = arith.constant dense<0.000000e+00> : vector<8x128xf32>
    %19 = tpu.matmul %11, %18, %cst_17 {dimension_numbers = #tpu.dot_dimension_numbers<[1], [0], [0], [1], [0, 0, 1, 1], [], []>} : vector<8x128xf32>, vector<128x128xf32>, vector<8x128xf32> -> vector<8x128xf32>
    %20 = arith.addf %17, %19 : vector<8x128xf32>
    %21 = math.tanh %20 : vector<8x128xf32>
    %22 = arith.index_cast %15 : i32 to index
    %c0_18 = arith.constant 0 : index
    %23 = vector.load %arg11[%22, %c0_18] : memref<64x128xf32, #tpu.memory_space<vmem>>, vector<8x128xf32>
    tpu.vector_store %arg11[%22, %c0_18], %21 {strides = array<i32>} : memref<64x128xf32, #tpu.memory_space<vmem>>, vector<8x128xf32>,
    %c8_i32_19 = arith.constant 8 : i32
    %24 = arith.muli %c0_i32_11, %c8_i32_19 : i32
    %c1_i32 = arith.constant 1 : i32
    %25 = arith.addi %24, %c1_i32 : i32
    %c8_i32_20 = arith.constant 8 : i32
    %26 = arith.muli %25, %c8_i32_20 : i32
    %27 = tpu.assume_multiple %26, 8 : i32
    %28 = arith.index_cast %27 : i32 to index
    %c0_21 = arith.constant 0 : index
    %29 = vector.load %arg11[%28, %c0_21] : memref<64x128xf32, #tpu.memory_space<vmem>>, vector<8x128xf32>
    %c0_22 = arith.constant 0 : index
    %c0_23 = arith.constant 0 : index
    %30 = vector.load %arg5[%c0_22, %c0_23] : memref<128x128xf32, #tpu.memory_space<vmem>>, vector<128x128xf32>
    %cst_24 = arith.constant dense<0.000000e+00> : vector<8x128xf32>
    %31 = tpu.matmul %21, %30, %cst_24 {dimension_numbers = #tpu.dot_dimension_numbers<[1], [0], [0], [1], [0, 0, 1, 1], [], []>} : vector<8x128xf32>, vector<128x128xf32>, vector<8x128xf32> -> vector<8x128xf32>
    %32 = arith.addf %29, %31 : vector<8x128xf32>
    %33 = math.tanh %32 : vector<8x128xf32>
    %34 = arith.index_cast %27 : i32 to index
    %c0_25 = arith.constant 0 : index
    %35 = vector.load %arg11[%34, %c0_25] : memref<64x128xf32, #tpu.memory_space<vmem>>, vector<8x128xf32>
    tpu.vector_store %arg11[%34, %c0_25], %33 {strides = array<i32>} : memref<64x128xf32, #tpu.memory_space<vmem>>, vector<8x128xf32>,
    %c8_i32_26 = arith.constant 8 : i32
    %36 = arith.muli %c0_i32_11, %c8_i32_26 : i32
    %c2_i32 = arith.constant 2 : i32
    %37 = arith.addi %36, %c2_i32 : i32
    %c8_i32_27 = arith.constant 8 : i32
    %38 = arith.muli %37, %c8_i32_27 : i32
    %39 = tpu.assume_multiple %38, 8 : i32
    %40 = arith.index_cast %39 : i32 to index
    %c0_28 = arith.constant 0 : index
    %41 = vector.load %arg11[%40, %c0_28] : memref<64x128xf32, #tpu.memory_space<vmem>>, vector<8x128xf32>
    %c0_29 = arith.constant 0 : index
    %c0_30 = arith.constant 0 : index
    %42 = vector.load %arg5[%c0_29, %c0_30] : memref<128x128xf32, #tpu.memory_space<vmem>>, vector<128x128xf32>
    %cst_31 = arith.constant dense<0.000000e+00> : vector<8x128xf32>
    %43 = tpu.matmul %33, %42, %cst_31 {dimension_numbers = #tpu.dot_dimension_numbers<[1], [0], [0], [1], [0, 0, 1, 1], [], []>} : vector<8x128xf32>, vector<128x128xf32>, vector<8x128xf32> -> vector<8x128xf32>
    %44 = arith.addf %41, %43 : vector<8x128xf32>
    %45 = math.tanh %44 : vector<8x128xf32>
    %46 = arith.index_cast %39 : i32 to index
    %c0_32 = arith.constant 0 : index
    %47 = vector.load %arg11[%46, %c0_32] : memref<64x128xf32, #tpu.memory_space<vmem>>, vector<8x128xf32>
    tpu.vector_store %arg11[%46, %c0_32], %45 {strides = array<i32>} : memref<64x128xf32, #tpu.memory_space<vmem>>, vector<8x128xf32>,
    %c8_i32_33 = arith.constant 8 : i32
    %48 = arith.muli %c0_i32_11, %c8_i32_33 : i32
    %c3_i32 = arith.constant 3 : i32
    %49 = arith.addi %48, %c3_i32 : i32
    %c8_i32_34 = arith.constant 8 : i32
    %50 = arith.muli %49, %c8_i32_34 : i32
    %51 = tpu.assume_multiple %50, 8 : i32
    %52 = arith.index_cast %51 : i32 to index
    %c0_35 = arith.constant 0 : index
    %53 = vector.load %arg11[%52, %c0_35] : memref<64x128xf32, #tpu.memory_space<vmem>>, vector<8x128xf32>
    %c0_36 = arith.constant 0 : index
    %c0_37 = arith.constant 0 : index
    %54 = vector.load %arg5[%c0_36, %c0_37] : memref<128x128xf32, #tpu.memory_space<vmem>>, vector<128x128xf32>
    %cst_38 = arith.constant dense<0.000000e+00> : vector<8x128xf32>
    %55 = tpu.matmul %45, %54, %cst_38 {dimension_numbers = #tpu.dot_dimension_numbers<[1], [0], [0], [1], [0, 0, 1, 1], [], []>} : vector<8x128xf32>, vector<128x128xf32>, vector<8x128xf32> -> vector<8x128xf32>
    %56 = arith.addf %53, %55 : vector<8x128xf32>
    %57 = math.tanh %56 : vector<8x128xf32>
    %58 = arith.index_cast %51 : i32 to index
    %c0_39 = arith.constant 0 : index
    %59 = vector.load %arg11[%58, %c0_39] : memref<64x128xf32, #tpu.memory_space<vmem>>, vector<8x128xf32>
    tpu.vector_store %arg11[%58, %c0_39], %57 {strides = array<i32>} : memref<64x128xf32, #tpu.memory_space<vmem>>, vector<8x128xf32>,
    %c8_i32_40 = arith.constant 8 : i32
    %60 = arith.muli %c0_i32_11, %c8_i32_40 : i32
    %c4_i32 = arith.constant 4 : i32
    %61 = arith.addi %60, %c4_i32 : i32
    %c8_i32_41 = arith.constant 8 : i32
    %62 = arith.muli %61, %c8_i32_41 : i32
    %63 = tpu.assume_multiple %62, 8 : i32
    %64 = arith.index_cast %63 : i32 to index
    %c0_42 = arith.constant 0 : index
    %65 = vector.load %arg11[%64, %c0_42] : memref<64x128xf32, #tpu.memory_space<vmem>>, vector<8x128xf32>
    %c0_43 = arith.constant 0 : index
    %c0_44 = arith.constant 0 : index
    %66 = vector.load %arg5[%c0_43, %c0_44] : memref<128x128xf32, #tpu.memory_space<vmem>>, vector<128x128xf32>
    %cst_45 = arith.constant dense<0.000000e+00> : vector<8x128xf32>
    %67 = tpu.matmul %57, %66, %cst_45 {dimension_numbers = #tpu.dot_dimension_numbers<[1], [0], [0], [1], [0, 0, 1, 1], [], []>} : vector<8x128xf32>, vector<128x128xf32>, vector<8x128xf32> -> vector<8x128xf32>
    %68 = arith.addf %65, %67 : vector<8x128xf32>
    %69 = math.tanh %68 : vector<8x128xf32>
    %70 = arith.index_cast %63 : i32 to index
    %c0_46 = arith.constant 0 : index
    %71 = vector.load %arg11[%70, %c0_46] : memref<64x128xf32, #tpu.memory_space<vmem>>, vector<8x128xf32>
    tpu.vector_store %arg11[%70, %c0_46], %69 {strides = array<i32>} : memref<64x128xf32, #tpu.memory_space<vmem>>, vector<8x128xf32>,
    %c8_i32_47 = arith.constant 8 : i32
    %72 = arith.muli %c0_i32_11, %c8_i32_47 : i32
    %c5_i32 = arith.constant 5 : i32
    %73 = arith.addi %72, %c5_i32 : i32
    %c8_i32_48 = arith.constant 8 : i32
    %74 = arith.muli %73, %c8_i32_48 : i32
    %75 = tpu.assume_multiple %74, 8 : i32
    %76 = arith.index_cast %75 : i32 to index
    %c0_49 = arith.constant 0 : index
    %77 = vector.load %arg11[%76, %c0_49] : memref<64x128xf32, #tpu.memory_space<vmem>>, vector<8x128xf32>
    %c0_50 = arith.constant 0 : index
    %c0_51 = arith.constant 0 : index
    %78 = vector.load %arg5[%c0_50, %c0_51] : memref<128x128xf32, #tpu.memory_space<vmem>>, vector<128x128xf32>
    %cst_52 = arith.constant dense<0.000000e+00> : vector<8x128xf32>
    %79 = tpu.matmul %69, %78, %cst_52 {dimension_numbers = #tpu.dot_dimension_numbers<[1], [0], [0], [1], [0, 0, 1, 1], [], []>} : vector<8x128xf32>, vector<128x128xf32>, vector<8x128xf32> -> vector<8x128xf32>
    %80 = arith.addf %77, %79 : vector<8x128xf32>
    %81 = math.tanh %80 : vector<8x128xf32>
    %82 = arith.index_cast %75 : i32 to index
    %c0_53 = arith.constant 0 : index
    %83 = vector.load %arg11[%82, %c0_53] : memref<64x128xf32, #tpu.memory_space<vmem>>, vector<8x128xf32>
    tpu.vector_store %arg11[%82, %c0_53], %81 {strides = array<i32>} : memref<64x128xf32, #tpu.memory_space<vmem>>, vector<8x128xf32>,
    %c8_i32_54 = arith.constant 8 : i32
    %84 = arith.muli %c0_i32_11, %c8_i32_54 : i32
    %c6_i32 = arith.constant 6 : i32
    %85 = arith.addi %84, %c6_i32 : i32
    %c8_i32_55 = arith.constant 8 : i32
    %86 = arith.muli %85, %c8_i32_55 : i32
    %87 = tpu.assume_multiple %86, 8 : i32
    %88 = arith.index_cast %87 : i32 to index
    %c0_56 = arith.constant 0 : index
    %89 = vector.load %arg11[%88, %c0_56] : memref<64x128xf32, #tpu.memory_space<vmem>>, vector<8x128xf32>
    %c0_57 = arith.constant 0 : index
    %c0_58 = arith.constant 0 : index
    %90 = vector.load %arg5[%c0_57, %c0_58] : memref<128x128xf32, #tpu.memory_space<vmem>>, vector<128x128xf32>
    %cst_59 = arith.constant dense<0.000000e+00> : vector<8x128xf32>
    %91 = tpu.matmul %81, %90, %cst_59 {dimension_numbers = #tpu.dot_dimension_numbers<[1], [0], [0], [1], [0, 0, 1, 1], [], []>} : vector<8x128xf32>, vector<128x128xf32>, vector<8x128xf32> -> vector<8x128xf32>
    %92 = arith.addf %89, %91 : vector<8x128xf32>
    %93 = math.tanh %92 : vector<8x128xf32>
    %94 = arith.index_cast %87 : i32 to index
    %c0_60 = arith.constant 0 : index
    %95 = vector.load %arg11[%94, %c0_60] : memref<64x128xf32, #tpu.memory_space<vmem>>, vector<8x128xf32>
    tpu.vector_store %arg11[%94, %c0_60], %93 {strides = array<i32>} : memref<64x128xf32, #tpu.memory_space<vmem>>, vector<8x128xf32>,
    %c8_i32_61 = arith.constant 8 : i32
    %96 = arith.muli %c0_i32_11, %c8_i32_61 : i32
    %c7_i32 = arith.constant 7 : i32
    %97 = arith.addi %96, %c7_i32 : i32
    %c8_i32_62 = arith.constant 8 : i32
    %98 = arith.muli %97, %c8_i32_62 : i32
    %99 = tpu.assume_multiple %98, 8 : i32
    %100 = arith.index_cast %99 : i32 to index
    %c0_63 = arith.constant 0 : index
    %101 = vector.load %arg11[%100, %c0_63] : memref<64x128xf32, #tpu.memory_space<vmem>>, vector<8x128xf32>
    %c0_64 = arith.constant 0 : index
    %c0_65 = arith.constant 0 : index
    %102 = vector.load %arg5[%c0_64, %c0_65] : memref<128x128xf32, #tpu.memory_space<vmem>>, vector<128x128xf32>
    %cst_66 = arith.constant dense<0.000000e+00> : vector<8x128xf32>
    %103 = tpu.matmul %93, %102, %cst_66 {dimension_numbers = #tpu.dot_dimension_numbers<[1], [0], [0], [1], [0, 0, 1, 1], [], []>} : vector<8x128xf32>, vector<128x128xf32>, vector<8x128xf32> -> vector<8x128xf32>
    %104 = arith.addf %101, %103 : vector<8x128xf32>
    %105 = math.tanh %104 : vector<8x128xf32>
    %106 = arith.index_cast %99 : i32 to index
    %c0_67 = arith.constant 0 : index
    %107 = vector.load %arg11[%106, %c0_67] : memref<64x128xf32, #tpu.memory_space<vmem>>, vector<8x128xf32>
    tpu.vector_store %arg11[%106, %c0_67], %105 {strides = array<i32>} : memref<64x128xf32, #tpu.memory_space<vmem>>, vector<8x128xf32>,
    %c1_i32_68 = arith.constant 1 : i32
    %c0_69 = arith.constant 0 : index
    %c0_70 = arith.constant 0 : index
    %108 = vector.load %arg10[%c0_69, %c0_70] : memref<8x128xf32, #tpu.memory_space<vmem>>, vector<8x128xf32>
    tpu.vector_store %arg10[%c0_69, %c0_70], %105 {strides = array<i32>} : memref<8x128xf32, #tpu.memory_space<vmem>>, vector<8x128xf32>,
    %c0_71 = arith.constant 0 : index
    %c0_72 = arith.constant 0 : index
    %109 = vector.load %arg11[%c0_71, %c0_72] : memref<64x128xf32, #tpu.memory_space<vmem>>, vector<64x128xf32>
    %c0_73 = arith.constant 0 : index
    %c0_74 = arith.constant 0 : index
    %110 = vector.load %arg7[%c0_73, %c0_74] : memref<128x128xf32, #tpu.memory_space<vmem>>, vector<128x128xf32>
    %cst_75 = arith.constant dense<0.000000e+00> : vector<64x128xf32>
    %111 = tpu.matmul %109, %110, %cst_75 {dimension_numbers = #tpu.dot_dimension_numbers<[1], [0], [0], [1], [0, 0, 1, 1], [], []>} : vector<64x128xf32>, vector<128x128xf32>, vector<64x128xf32> -> vector<64x128xf32>
    %c0_76 = arith.constant 0 : index
    %c0_77 = arith.constant 0 : index
    %112 = vector.load %arg8[%c0_76, %c0_77] : memref<1x128xf32, #tpu.memory_space<vmem>>, vector<1x128xf32>
    %113 = vector.broadcast %112 : vector<1x128xf32> to vector<64x128xf32>
    %114 = arith.addf %111, %113 : vector<64x128xf32>
    %115 = vector.shape_cast %114 : vector<64x128xf32> to vector<8x8x128xf32>
    %c0_78 = arith.constant 0 : index
    %c0_79 = arith.constant 0 : index
    %c0_80 = arith.constant 0 : index
    %116 = vector.load %arg9[%c0_78, %c0_79, %c0_80] : memref<8x8x128xf32, #tpu.memory_space<vmem>>, vector<8x8x128xf32>
    tpu.vector_store %arg9[%c0_78, %c0_79, %c0_80], %115 {strides = array<i32>} : memref<8x8x128xf32, #tpu.memory_space<vmem>>, vector<8x8x128xf32>,
    return
  }
  func.func @transform_0(%arg0: i32, %arg1: i32) -> (i32, i32, i32) {
    %c0_i32 = arith.constant 0 : i32
    %c0_i32_0 = arith.constant 0 : i32
    return %arg1, %arg0, %c0_i32 : i32, i32, i32
  }
  func.func @transform_1(%arg0: i32, %arg1: i32) -> (i32, i32) {
    %c0_i32 = arith.constant 0 : i32
    %c0_i32_0 = arith.constant 0 : i32
    return %arg0, %c0_i32 : i32, i32
  }
  func.func @transform_2(%arg0: i32, %arg1: i32) -> (i32, i32) {
    %c0_i32 = arith.constant 0 : i32
    %c0_i32_0 = arith.constant 0 : i32
    %c0_i32_1 = arith.constant 0 : i32
    return %c0_i32, %c0_i32_0 : i32, i32
  }
  func.func @transform_3(%arg0: i32, %arg1: i32) -> (i32, i32) {
    %c0_i32 = arith.constant 0 : i32
    %c0_i32_0 = arith.constant 0 : i32
    %c0_i32_1 = arith.constant 0 : i32
    return %c0_i32, %c0_i32_0 : i32, i32
  }
  func.func @transform_4(%arg0: i32, %arg1: i32) -> (i32, i32) {
    %c0_i32 = arith.constant 0 : i32
    %c0_i32_0 = arith.constant 0 : i32
    %c0_i32_1 = arith.constant 0 : i32
    return %c0_i32, %c0_i32_0 : i32, i32
  }
  func.func @transform_5(%arg0: i32, %arg1: i32) -> (i32, i32) {
    %c0_i32 = arith.constant 0 : i32
    %c0_i32_0 = arith.constant 0 : i32
    %c0_i32_1 = arith.constant 0 : i32
    return %c0_i32, %c0_i32_0 : i32, i32
  }
  func.func @transform_6(%arg0: i32, %arg1: i32) -> (i32, i32) {
    %c0_i32 = arith.constant 0 : i32
    %c0_i32_0 = arith.constant 0 : i32
    %c0_i32_1 = arith.constant 0 : i32
    return %c0_i32, %c0_i32_0 : i32, i32
  }
  func.func @transform_7(%arg0: i32, %arg1: i32) -> (i32, i32, i32) {
    %c0_i32 = arith.constant 0 : i32
    %c0_i32_0 = arith.constant 0 : i32
    return %arg1, %arg0, %c0_i32 : i32, i32, i32
  }
  func.func @transform_8(%arg0: i32, %arg1: i32) -> (i32, i32) {
    %c0_i32 = arith.constant 0 : i32
    %c0_i32_0 = arith.constant 0 : i32
    return %arg0, %c0_i32 : i32, i32
  }
}

</mosaic_0001>

<bundles_post_ra>
// kernel: _rnn_forward.1
= control target key start
LH: loop header
LB: loop body
LE: loop exit
PB: predicated region body
PF: predicated region fallthrough
CT: control target
= control target key end

     0   :  { %14 = vsyncpa [#allocation4], 0  ;;  %s1038_s0 = inlined_call_operand.vmem [shape: f32[8,8,4], index: 0, kind: input, shape index: {}]   ;;  %s1039_s1 = inlined_call_operand.vmem [shape: f32[8,128], index: 1, kind: input, shape index: {}]   ;;  %s1040_s2 = inlined_call_operand.vmem [shape: f32[4,128], index: 2, kind: input, shape index: {}]   ;;  %s1041_s3 = inlined_call_operand.hbm [shape: f32[128,128], index: 3, kind: input, shape index: {}]   ;;  %s1042_s4 = inlined_call_operand.vmem [shape: f32[1,128], index: 4, kind: input, shape index: {}]   ;;  %s1043_s5 = inlined_call_operand.hbm [shape: f32[128,128], index: 5, kind: input, shape index: {}]   ;;  %s1044_s6 = inlined_call_operand.vmem [shape: f32[1,128], index: 6, kind: input, shape index: {}]   ;;  %s1045_s7 = inlined_call_operand.hbm [shape: f32[8,8,128], index: 7, kind: output, shape index: {0}]   ;;  %s1046_s8 = inlined_call_operand.hbm [shape: f32[8,128], index: 8, kind: output, shape index: {1}]  }
   0x1   :  { %15 = vsyncpa [#allocation7], 0 }
   0x2   :  { %16 = vsyncpa [#allocation5], 0 }
   0x3   :  { %17 = vsyncpa [#allocation10], 0  ;;  %s28_s29 = sshll.u32 %s1041_s3, 4  ;;  %s739_s30 = smov [#allocation3]   ;;  %s29_s29 = int_to_ptr.hbm [resolvable:$true] %s28_s29 }
   0x4   :  { %s30_s9 = sshll.u32 %s739_s30, 4  ;;  %s43_s12 = sshll.u32 %s1043_s5, 4  ;;  %s31_s9 = int_to_ptr.vmem [resolvable:$true] %s30_s9  ;;  %s44_s12 = int_to_ptr.hbm [resolvable:$true] %s43_s12 }
   0x5   :  { %s740_s13 = smov 128   ;;  %s741_s14 = smov 8  }
   0x6   :  { %36 = dma.hbm_to_vmem [thread:$0]  %s29_s29, 2048, %s31_s9, [#allocation4], %s740_s13, %s740_s13, %s741_s14  }
   0x7   :  { %s742_s15 = smov [#allocation6]  }
   0x8   :  { %s45_s16 = sshll.u32 %s742_s15, 4  ;;  %s46_s16 = int_to_ptr.vmem [resolvable:$true] %s45_s16 }
   0x9   :  { %51 = dma.hbm_to_vmem [thread:$0]  %s44_s12, 2048, %s46_s16, [#allocation7], %s740_s13, %s740_s13, %s741_s14  }
   0xa   :  { %731 = dma.done.wait [#allocation4], 2048  }
   0xb   :  { %732 = vsyncadd [#allocation4], 4294965248 }
   0xc   :  { %733 = dma.done.wait [#allocation7], 2048  }
   0xd   :  { %734 = vsyncadd [#allocation7], 4294965248  ;;  %v802_v0 = vld [vmem:[#allocation3 + $0x78] sm:$0xff]  ;;  %v804_v1 = vld [vmem:[#allocation3 + $0x70] sm:$0xff]  ;;  %vm106_vm0 = vcmask 1043456   ;;  %vm81_vm1 = vcmask 31744  }
   0xe   :  { %177 = vmatpush.msra.mxu1 %v802_v0  ;;  %218 = vmatpush.msra.mxu3 %v802_v0  ;;  %v808_v2 = vld [vmem:[#allocation3 + $0x68] sm:$0xff]  ;;  %v812_v3 = vld [vmem:[#allocation3 + $0x60] sm:$0xff]  ;;  %v821_v6 = vld [vmem:[#allocation3 + $0x58] sm:$0xff]  ;;  %s585_s5 = sshll.u32 %s1046_s8, 4  ;;  %s744_s17 = smov [#allocation8]   ;;  %s586_s5 = int_to_ptr.hbm [resolvable:$true] %s585_s5 }
   0xf   :  { %v76_v4 = vld [vmem:[%s1040_s2] sm:$0xf]  ;;  %v511_v8 = vld [vmem:[#allocation6 + $0x78] sm:$0xff]  ;;  %v510_v9 = vld [vmem:[#allocation6 + $0x70] sm:$0xff]  ;;  %s569_s18 = sshll.u32 %s744_s17, 4  ;;  %s571_s2 = sshll.u32 %s1045_s7, 4  ;;  %s570_s18 = int_to_ptr.vmem [resolvable:$true] %s569_s18  ;;  %s572_s2 = int_to_ptr.hbm [resolvable:$true] %s571_s2 }
  0x10   :  { %178 = vmatpush.msra.mxu1 %v804_v1  ;;  %219 = vmatpush.msra.mxu3 %v804_v1  ;;  %v68_v5 = vld [vmem:[%s1038_s0] sm:$0xff]  ;;  %v829_v10 = vld [vmem:[#allocation3 + $0x50] sm:$0xff]  ;;  %v509_v11 = vld [vmem:[#allocation6 + $0x68] sm:$0xff] }
  0x11   :  { %601 = vmatpush.msk.msra.mxu0 %vm106_vm0, %v76_v4  ;;  %610 = vmatpush.msk.msra.mxu2 %vm106_vm0, %v76_v4  ;;  %v72_v7 = vld [vmem:[%s1038_s0 + $0x20] sm:$0xff]  ;;  %v834_v12 = vld [vmem:[#allocation3 + $0x48] sm:$0xff]  ;;  %v507_v16 = vld [vmem:[#allocation6 + $0x58] sm:$0xff] }
  0x12   :  { %179 = vmatpush.msra.mxu1 %v808_v2  ;;  %602 = vmatmul.msk.f32.vlgmr.msra.gmra.mxu0 %vm81_vm1, %v68_v5  ;;  %v508_v13 = vld [vmem:[#allocation6 + $0x60] sm:$0xff]  ;;  %v73_v15 = vld [vmem:[%s1038_s0 + $0x28] sm:$0xff]  ;;  %v847_v17 = vld [vmem:[#allocation3 + $0x38] sm:$0xff] }
  0x13   :  { %606 = vmatmul.msk.f32.vlgmr.msra.gmra.mxu2 %vm81_vm1, %v72_v7  ;;  %220 = vmatpush.msra.mxu3 %v808_v2  ;;  %v839_v14 = vld [vmem:[#allocation3 + $0x40] sm:$0xff]  ;;  %v506_v18 = vld [vmem:[#allocation6 + $0x50] sm:$0xff]  ;;  %v505_v20 = vld [vmem:[#allocation6 + $0x48] sm:$0xff] }
  0x14   :  { %180 = vmatpush.msra.mxu1 %v812_v3  ;;  %516 = vmatpush.msrb.mxu2 %v511_v8  ;;  %v852_v19 = vld [vmem:[#allocation3 + $0x30] sm:$0xff]  ;;  %v857_v21 = vld [vmem:[#allocation3 + $0x28] sm:$0xff]  ;;  %v504_v22 = vld [vmem:[#allocation6 + $0x40] sm:$0xff] }
  0x15   :  { %341 = vmatpush.msrb.mxu0 %v802_v0  ;;  %221 = vmatpush.msra.mxu3 %v812_v3  ;;  %v862_v23 = vld [vmem:[#allocation3 + $0x20] sm:$0xff]  ;;  %v74_v24 = vld [vmem:[%s1038_s0 + $0x30] sm:$0xff]  ;;  %v503_v25 = vld [vmem:[#allocation6 + $0x38] sm:$0xff] }
  0x16   :  { %181 = vmatpush.msra.mxu1 %v821_v6  ;;  %517 = vmatpush.msrb.mxu2 %v510_v9  ;;  %v870_v26 = vld [vmem:[#allocation3 + $0x18] sm:$0xff]  ;;  %v502_v27 = vld [vmem:[#allocation6 + $0x30] sm:$0xff]  ;;  %v880_v29 = vld [vmem:[#allocation3 + $0x8] sm:$0xff] }
  0x17   :  { %342 = vmatpush.msrb.mxu0 %v804_v1  ;;  %222 = vmatpush.msra.mxu3 %v821_v6  ;;  %v875_v28 = vld [vmem:[#allocation3 + $0x10] sm:$0xff]  ;;  %v885_v30 = vld [vmem:[#allocation3] sm:$0xff]  ;;  %v501_v32 = vld [vmem:[#allocation6 + $0x28] sm:$0xff] }
  0x18   :  { %182 = vmatpush.msra.mxu1 %v829_v10  ;;  %518 = vmatpush.msrb.mxu2 %v509_v11  ;;  %v66_v31 = vld [vmem:[%s1039_s1] sm:$0xff]  ;;  %v75_v34 = vld [vmem:[%s1038_s0 + $0x38] sm:$0xff]  ;;  %v498_v36 = vld [vmem:[#allocation6 + $0x10] sm:$0xff] }
  0x19   :  { %343 = vmatpush.msrb.mxu0 %v808_v2  ;;  %223 = vmatpush.msra.mxu3 %v829_v10  ;;  %v500_v33 = vld [vmem:[#allocation6 + $0x20] sm:$0xff]  ;;  %v499_v35 = vld [vmem:[#allocation6 + $0x18] sm:$0xff]  ;;  %v497_v37 = vld [vmem:[#allocation6 + $0x8] sm:$0xff] }
  0x1a   :  { %183 = vmatpush.msra.mxu1 %v834_v12  ;;  %519 = vmatpush.msrb.mxu2 %v508_v13  ;;  %v496_v38 = vld [vmem:[#allocation6] sm:$0xff]  ;;  %v69_v39 = vld [vmem:[%s1038_s0 + $0x8] sm:$0xff]  ;;  %v70_v48 = vld [vmem:[%s1038_s0 + $0x10] sm:$0xff] }
  0x1b   :  { %607 = vmatmul.msk.f32.gmra.mxu2 %vm81_vm1, %v73_v15  ;;  %224 = vmatpush.msra.mxu3 %v834_v12  ;;  %v979_v40 = vld [vmem:[%s1042_s4] ss:$0 sm:$0xff]  ;;  %v71_v59 = vld [vmem:[%s1038_s0 + $0x18] sm:$0xff]  ;;  %s743_s0 = smov [#allocation9]  }
  0x1c   :  { %184 = vmatpush.msra.mxu1 %v839_v14  ;;  %520 = vmatpush.msrb.mxu2 %v507_v16  ;;  %v1008_v53 = vld [vmem:[%s1044_s6] ss:$0 sm:$0xff]  ;;  %s583_s6 = sshll.u32 %s743_s0, 4  ;;  %s584_s6 = int_to_ptr.vmem [resolvable:$true] %s583_s6 }
  0x1d   :  { %344 = vmatpush.msrb.mxu0 %v812_v3  ;;  %225 = vmatpush.msra.mxu3 %v839_v14 }
  0x1e   :  { %185 = vmatpush.msra.mxu1 %v847_v17  ;;  %521 = vmatpush.msrb.mxu2 %v506_v18 }
  0x1f   :  { %345 = vmatpush.msrb.mxu0 %v821_v6  ;;  %226 = vmatpush.msra.mxu3 %v847_v17 }
  0x20   :  { %186 = vmatpush.msra.mxu1 %v852_v19  ;;  %522 = vmatpush.msrb.mxu2 %v505_v20 }
  0x21   :  { %346 = vmatpush.msrb.mxu0 %v829_v10  ;;  %227 = vmatpush.msra.mxu3 %v852_v19 }
  0x22   :  { %187 = vmatpush.msra.mxu1 %v857_v21  ;;  %523 = vmatpush.msrb.mxu2 %v504_v22 }
  0x23   :  { %608 = vmatmul.msk.f32.gmra.mxu2 %vm81_vm1, %v74_v24  ;;  %228 = vmatpush.msra.mxu3 %v857_v21 }
  0x24   :  { %188 = vmatpush.msra.mxu1 %v862_v23  ;;  %524 = vmatpush.msrb.mxu2 %v503_v25 }
  0x25   :  { %347 = vmatpush.msrb.mxu0 %v834_v12  ;;  %229 = vmatpush.msra.mxu3 %v862_v23 }
  0x26   :  { %189 = vmatpush.msra.mxu1 %v870_v26  ;;  %525 = vmatpush.msrb.mxu2 %v502_v27 }
  0x27   :  { %348 = vmatpush.msrb.mxu0 %v839_v14  ;;  %230 = vmatpush.msra.mxu3 %v870_v26 }
  0x28   :  { %190 = vmatpush.msra.mxu1 %v875_v28  ;;  %526 = vmatpush.msrb.mxu2 %v501_v32 }
  0x29   :  { %349 = vmatpush.msrb.mxu0 %v847_v17  ;;  %231 = vmatpush.msra.mxu3 %v875_v28 }
  0x2a   :  { %191 = vmatpush.msra.mxu1 %v880_v29  ;;  %527 = vmatpush.msrb.mxu2 %v500_v33 }
  0x2b   :  { %350 = vmatpush.msrb.mxu0 %v852_v19  ;;  %232 = vmatpush.msra.mxu3 %v880_v29 }
  0x2c   :  { %192 = vmatpush.msra.mxu1 %v885_v30  ;;  %609 = vmatmul.msk.f32.gmra.mxu2 %vm81_vm1, %v75_v34 }
  0x2d   :  { %193 = vmatmul.f32.vlgmr.msra.gmra.mxu1 %v66_v31  ;;  %351 = vmatpush.msrb.mxu0 %v857_v21 }
  0x2e   :  { %300 = vmatpush.msrb.mxu1 %v802_v0  ;;  %233 = vmatpush.msra.mxu3 %v885_v30 }
  0x2f   :  { %352 = vmatpush.msrb.mxu0 %v862_v23  ;;  %528 = vmatpush.msrb.mxu2 %v499_v35 }
  0x30   :  { %259 = vmatpush.msrb.mxu3 %v802_v0  ;;  %301 = vmatpush.msrb.mxu1 %v804_v1 }
  0x31   :  { %353 = vmatpush.msrb.mxu0 %v870_v26  ;;  %529 = vmatpush.msrb.mxu2 %v498_v36 }
  0x32   :  { %260 = vmatpush.msrb.mxu3 %v804_v1  ;;  %302 = vmatpush.msrb.mxu1 %v808_v2 }
  0x33   :  { %354 = vmatpush.msrb.mxu0 %v875_v28  ;;  %530 = vmatpush.msrb.mxu2 %v497_v37 }
  0x34   :  { %261 = vmatpush.msrb.mxu3 %v808_v2  ;;  %303 = vmatpush.msrb.mxu1 %v812_v3 }
  0x35   :  { %355 = vmatpush.msrb.mxu0 %v880_v29  ;;  %531 = vmatpush.msrb.mxu2 %v496_v38 }
  0x36   :  { %262 = vmatpush.msrb.mxu3 %v812_v3  ;;  %304 = vmatpush.msrb.mxu1 %v821_v6 }
  0x37   :  { %356 = vmatpush.msrb.mxu0 %v885_v30 }
  0x38   :  { %263 = vmatpush.msrb.mxu3 %v821_v6  ;;  %305 = vmatpush.msrb.mxu1 %v829_v10 }
  0x39   :  { %423 = vmatpush.msra.mxu0 %v802_v0 }
  0x3a   :  { %264 = vmatpush.msrb.mxu3 %v829_v10  ;;  %306 = vmatpush.msrb.mxu1 %v834_v12 }
  0x3b   :  { %424 = vmatpush.msra.mxu0 %v804_v1 }
  0x3c   :  { %265 = vmatpush.msrb.mxu3 %v834_v12  ;;  %307 = vmatpush.msrb.mxu1 %v839_v14 }
  0x3d   :  { %425 = vmatpush.msra.mxu0 %v808_v2 }
  0x3e   :  { %266 = vmatpush.msrb.mxu3 %v839_v14  ;;  %308 = vmatpush.msrb.mxu1 %v847_v17 }
  0x3f   :  { %426 = vmatpush.msra.mxu0 %v812_v3 }
  0x40   :  { %267 = vmatpush.msrb.mxu3 %v847_v17  ;;  %309 = vmatpush.msrb.mxu1 %v852_v19 }
  0x41   :  { %427 = vmatpush.msra.mxu0 %v821_v6 }
  0x42   :  { %268 = vmatpush.msrb.mxu3 %v852_v19  ;;  %310 = vmatpush.msrb.mxu1 %v857_v21 }
  0x43   :  { %428 = vmatpush.msra.mxu0 %v829_v10 }
  0x44   :  { %269 = vmatpush.msrb.mxu3 %v857_v21  ;;  %311 = vmatpush.msrb.mxu1 %v862_v23 }
  0x45   :  { %429 = vmatpush.msra.mxu0 %v834_v12 }
  0x46   :  { %270 = vmatpush.msrb.mxu3 %v862_v23  ;;  %312 = vmatpush.msrb.mxu1 %v870_v26 }
  0x47   :  { %430 = vmatpush.msra.mxu0 %v839_v14 }
  0x48   :  { %271 = vmatpush.msrb.mxu3 %v870_v26  ;;  %313 = vmatpush.msrb.mxu1 %v875_v28 }
  0x49   :  { %431 = vmatpush.msra.mxu0 %v847_v17 }
  0x4a   :  { %272 = vmatpush.msrb.mxu3 %v875_v28  ;;  %314 = vmatpush.msrb.mxu1 %v880_v29 }
  0x4b   :  { %432 = vmatpush.msra.mxu0 %v852_v19 }
  0x4c   :  { %273 = vmatpush.msrb.mxu3 %v880_v29  ;;  %315 = vmatpush.msrb.mxu1 %v885_v30 }
  0x4d   :  { %433 = vmatpush.msra.mxu0 %v857_v21 }
  0x4e   :  { %464 = vmatpush.msra.mxu1 %v802_v0  ;;  %274 = vmatpush.msrb.mxu3 %v885_v30 }
  0x4f   :  { %434 = vmatpush.msra.mxu0 %v862_v23 }
  0x50   :  { %465 = vmatpush.msra.mxu1 %v804_v1  ;;  %603 = vmatmul.msk.f32.gmra.mxu0 %vm81_vm1, %v69_v39 }
  0x51   :  { %435 = vmatpush.msra.mxu0 %v870_v26 }
  0x52   :  { %466 = vmatpush.msra.mxu1 %v808_v2 }
  0x53   :  { %436 = vmatpush.msra.mxu0 %v875_v28 }
  0x54   :  { %467 = vmatpush.msra.mxu1 %v812_v3 }
  0x55   :  { %437 = vmatpush.msra.mxu0 %v880_v29 }
  0x56   :  { %468 = vmatpush.msra.mxu1 %v821_v6 }
  0x57   :  { %438 = vmatpush.msra.mxu0 %v885_v30 }
  0x58   :  { %469 = vmatpush.msra.mxu1 %v829_v10  ;;  %604 = vmatmul.msk.f32.gmra.mxu0 %vm81_vm1, %v70_v48 }
  0x5a   :  { %470 = vmatpush.msra.mxu1 %v834_v12 }
  0x5c   :  { %471 = vmatpush.msra.mxu1 %v839_v14 }
  0x5e   :  { %472 = vmatpush.msra.mxu1 %v847_v17 }
  0x60   :  { %473 = vmatpush.msra.mxu1 %v852_v19  ;;  %605 = vmatmul.msk.f32.gmra.mxu0 %vm81_vm1, %v71_v59 }
  0x62   :  { %474 = vmatpush.msra.mxu1 %v857_v21 }
  0x64   :  { %475 = vmatpush.msra.mxu1 %v862_v23 }
  0x66   :  { %476 = vmatpush.msra.mxu1 %v870_v26 }
  0x68   :  { %477 = vmatpush.msra.mxu1 %v875_v28 }
  0x6a   :  { %478 = vmatpush.msra.mxu1 %v880_v29 }
  0x6c   :  { %479 = vmatpush.msra.mxu1 %v885_v30 }
  0x8f   :  { %v127_v41 = vpop.f32.mrf.mxu0 }
  0x90   :  { %v128_v42 = vadd.f32 %v979_v40, %v127_v41 }
  0x96   :  { %v139_v46 = vpop.f32.mrf.mxu2 }
  0x9e   :  { %v142_v47 = vpop.f32.mrf.mxu2 }
  0x9f   :  { %v143_v16 = vadd.f32 %v979_v40, %v142_v47 }
  0xa6   :  { %v145_v49 = vpop.f32.mrf.mxu2 }
  0xa7   :  { %v146_v22 = vadd.f32 %v979_v40, %v145_v49 }
  0xaa   :  { %v194_v43 = vpop.f32.mrf.mxu1 }
  0xab   :  { %v197_v44 = vadd.f32 %v194_v43, %v128_v42 }
  0xad   :  { %619 = vtanh.f32 %v197_v44 }
  0xaf   :  { %v1002_v50 = vpop.f32.mrf.mxu2 }
  0xb3   :  { %v620_v45 = vpop.eup %619 }
  0xb4   :  { %234 = vmatmul.f32.vlgmr.msra.gmra.mxu3 %v620_v45  ;;  %532 = vmatmul.f32.vlgmr.msrb.gmra.mxu2 %v620_v45 }
  0xb5   :  { %382 = vmatpush.msra.mxu3 %v802_v0 }
  0xb7   :  { %383 = vmatpush.msra.mxu3 %v804_v1 }
  0xb9   :  { %384 = vmatpush.msra.mxu3 %v808_v2 }
  0xbb   :  { %385 = vmatpush.msra.mxu3 %v812_v3 }
  0xbd   :  { %386 = vmatpush.msra.mxu3 %v821_v6 }
  0xbf   :  { %387 = vmatpush.msra.mxu3 %v829_v10  ;;  %v140_v10 = vadd.f32 %v979_v40, %v139_v46 }
  0xc1   :  { %388 = vmatpush.msra.mxu3 %v834_v12 }
  0xc3   :  { %389 = vmatpush.msra.mxu3 %v839_v14 }
  0xc5   :  { %390 = vmatpush.msra.mxu3 %v847_v17 }
  0xc7   :  { %391 = vmatpush.msra.mxu3 %v852_v19 }
  0xc9   :  { %392 = vmatpush.msra.mxu3 %v857_v21 }
  0xcb   :  { %393 = vmatpush.msra.mxu3 %v862_v23 }
  0xcd   :  { %394 = vmatpush.msra.mxu3 %v870_v26  ;;  %v130_v51 = vpop.f32.mrf.mxu0 }
  0xce   :  { %v131_v52 = vadd.f32 %v979_v40, %v130_v51 }
  0xcf   :  { %395 = vmatpush.msra.mxu3 %v875_v28  ;;  %v149_v28 = vadd.f32 %v979_v40, %v1002_v50 }
  0xd1   :  { %396 = vmatpush.msra.mxu3 %v880_v29 }
  0xd3   :  { %397 = vmatpush.msra.mxu3 %v885_v30 }
  0xd5   :  { %v133_v60 = vpop.f32.mrf.mxu0 }
  0xd6   :  { %v134_v61 = vadd.f32 %v979_v40, %v133_v60 }
  0xdd   :  { %v136_v3 = vpop.f32.mrf.mxu0 }
  0xde   :  { %v137_v4 = vadd.f32 %v979_v40, %v136_v3 }
 0x137   :  { %v235_v54 = vpop.f32.mrf.mxu3  ;;  %v533_v55 = vpop.f32.mrf.mxu2 }
 0x138   :  { %v238_v56 = vadd.f32 %v235_v54, %v131_v52  ;;  %v534_v57 = vadd.f32 %v1008_v53, %v533_v55 }
 0x13a   :  { %621 = vtanh.f32 %v238_v56  ;;  %557 = vst [vmem:[#allocation8] sm:$0xff] %v534_v57 }
 0x140   :  { %v622_v58 = vpop.eup %621 }
 0x141   :  { %275 = vmatmul.f32.vlgmr.msrb.gmra.mxu3 %v622_v58  ;;  %535 = vmatmul.f32.gmra.mxu2 %v622_v58 }
 0x1c4   :  { %v276_v62 = vpop.f32.mrf.mxu3  ;;  %v536_v63 = vpop.f32.mrf.mxu2 }
 0x1c5   :  { %v279_v0 = vadd.f32 %v276_v62, %v134_v61  ;;  %v537_v1 = vadd.f32 %v1008_v53, %v536_v63 }
 0x1c7   :  { %623 = vtanh.f32 %v279_v0  ;;  %558 = vst [vmem:[#allocation8 + $0x8] sm:$0xff] %v537_v1 }
 0x1cd   :  { %v624_v2 = vpop.eup %623 }
 0x1ce   :  { %316 = vmatmul.f32.vlgmr.msrb.gmra.mxu1 %v624_v2  ;;  %538 = vmatmul.f32.gmra.mxu2 %v624_v2 }
 0x24b   :  { %v317_v5 = vpop.f32.mrf.mxu1 }
 0x24c   :  { %v320_v6 = vadd.f32 %v317_v5, %v137_v4 }
 0x24e   :  { %625 = vtanh.f32 %v320_v6 }
 0x251   :  { %v539_v7 = vpop.f32.mrf.mxu2 }
 0x252   :  { %v540_v8 = vadd.f32 %v1008_v53, %v539_v7 }
 0x254   :  { %v626_v9 = vpop.eup %625  ;;  %559 = vst [vmem:[#allocation8 + $0x10] sm:$0xff] %v540_v8 }
 0x255   :  { %357 = vmatmul.f32.vlgmr.msrb.gmra.mxu0 %v626_v9  ;;  %541 = vmatmul.f32.gmra.mxu2 %v626_v9 }
 0x2d2   :  { %v358_v11 = vpop.f32.mrf.mxu0 }
 0x2d3   :  { %v361_v12 = vadd.f32 %v358_v11, %v140_v10 }
 0x2d5   :  { %627 = vtanh.f32 %v361_v12 }
 0x2d8   :  { %v542_v13 = vpop.f32.mrf.mxu2 }
 0x2d9   :  { %v543_v14 = vadd.f32 %v1008_v53, %v542_v13 }
 0x2db   :  { %v628_v15 = vpop.eup %627  ;;  %560 = vst [vmem:[#allocation8 + $0x18] sm:$0xff] %v543_v14 }
 0x2dc   :  { %398 = vmatmul.f32.vlgmr.msra.gmra.mxu3 %v628_v15  ;;  %544 = vmatmul.f32.gmra.mxu2 %v628_v15 }
 0x35f   :  { %v399_v17 = vpop.f32.mrf.mxu3  ;;  %v545_v18 = vpop.f32.mrf.mxu2 }
 0x360   :  { %v402_v19 = vadd.f32 %v399_v17, %v143_v16  ;;  %v546_v20 = vadd.f32 %v1008_v53, %v545_v18 }
 0x362   :  { %629 = vtanh.f32 %v402_v19  ;;  %561 = vst [vmem:[#allocation8 + $0x20] sm:$0xff] %v546_v20 }
 0x368   :  { %v630_v21 = vpop.eup %629 }
 0x369   :  { %439 = vmatmul.f32.vlgmr.msra.gmra.mxu0 %v630_v21  ;;  %547 = vmatmul.f32.gmra.mxu2 %v630_v21 }
 0x3e6   :  { %v440_v23 = vpop.f32.mrf.mxu0 }
 0x3e7   :  { %v443_v24 = vadd.f32 %v440_v23, %v146_v22 }
 0x3e9   :  { %631 = vtanh.f32 %v443_v24 }
 0x3ec   :  { %v548_v25 = vpop.f32.mrf.mxu2 }
 0x3ed   :  { %v549_v26 = vadd.f32 %v1008_v53, %v548_v25 }
 0x3ef   :  { %v632_v27 = vpop.eup %631  ;;  %562 = vst [vmem:[#allocation8 + $0x28] sm:$0xff] %v549_v26 }
 0x3f0   :  { %480 = vmatmul.f32.vlgmr.msra.gmra.mxu1 %v632_v27  ;;  %550 = vmatmul.f32.gmra.mxu2 %v632_v27 }
 0x46d   :  { %v481_v29 = vpop.f32.mrf.mxu1 }
 0x46e   :  { %v484_v30 = vadd.f32 %v481_v29, %v149_v28 }
 0x470   :  { %633 = vtanh.f32 %v484_v30 }
 0x473   :  { %v551_v31 = vpop.f32.mrf.mxu2 }
 0x474   :  { %v552_v32 = vadd.f32 %v1008_v53, %v551_v31 }
 0x476   :  { %v634_v33 = vpop.eup %633  ;;  %563 = vst [vmem:[#allocation8 + $0x30] sm:$0xff] %v552_v32 }
 0x477   :  { %487 = vst [vmem:[#allocation9] sm:$0xff] %v634_v33  ;;  %553 = vmatmul.f32.gmra.mxu2 %v634_v33 }
 0x478   :  { %588 = dma.vmem_to_hbm [thread:$0]  %s584_s6, 128, %s586_s5, [#allocation10]  }
 0x4fa   :  { %v554_v34 = vpop.f32.mrf.mxu2 }
 0x4fb   :  { %v555_v35 = vadd.f32 %v1008_v53, %v554_v34 }
 0x4fd   :  { %564 = vst [vmem:[#allocation8 + $0x38] sm:$0xff] %v555_v35 }
 0x4fe   :  { %577 = dma.vmem_to_hbm [thread:$0]  %s570_s18, 1024, %s572_s2, [#allocation5], %s740_s13, %s740_s13, %s741_s14  }
 0x4ff   :  { %735 = dma.done.wait [#allocation5], 1024  }
 0x500   :  { %736 = vsyncadd [#allocation5], 4294966272 }
 0x501   :  { %737 = dma.done.wait [#allocation10], 128  }
 0x502   :  { %738 = vsyncadd [#allocation10], 4294967168 }
 0x503   :  { %597 = vsyncpa [#allocation4], 1 }
 0x504   :  { %598 = vsyncpa [#allocation7], 1 }
 0x505   :  { %599 = vsyncpa [#allocation5], 1 }
 0x506   :  { %600 = vsyncpa [#allocation10], 1 }

// kernel: _rnn_forward.1
= control target key start
LH: loop header
LB: loop body
LE: loop exit
PB: predicated region body
PF: predicated region fallthrough
CT: control target
= control target key end

     0   :  { %14 = vsyncpa [#allocation4], 0  ;;  %s1038_s0 = inlined_call_operand.vmem [shape: f32[8,8,4], index: 0, kind: input, shape index: {}]   ;;  %s1039_s1 = inlined_call_operand.vmem [shape: f32[8,128], index: 1, kind: input, shape index: {}]   ;;  %s1040_s2 = inlined_call_operand.vmem [shape: f32[4,128], index: 2, kind: input, shape index: {}]   ;;  %s1041_s3 = inlined_call_operand.hbm [shape: f32[128,128], index: 3, kind: input, shape index: {}]   ;;  %s1042_s4 = inlined_call_operand.vmem [shape: f32[1,128], index: 4, kind: input, shape index: {}]   ;;  %s1043_s5 = inlined_call_operand.hbm [shape: f32[128,128], index: 5, kind: input, shape index: {}]   ;;  %s1044_s6 = inlined_call_operand.vmem [shape: f32[1,128], index: 6, kind: input, shape index: {}]   ;;  %s1045_s7 = inlined_call_operand.hbm [shape: f32[8,8,128], index: 7, kind: output, shape index: {0}]   ;;  %s1046_s8 = inlined_call_operand.hbm [shape: f32[8,128], index: 8, kind: output, shape index: {1}]  }
   0x1   :  { %15 = vsyncpa [#allocation7], 0 }
   0x2   :  { %16 = vsyncpa [#allocation5], 0 }
   0x3   :  { %17 = vsyncpa [#allocation10], 0  ;;  %s28_s29 = sshll.u32 %s1041_s3, 4  ;;  %s739_s30 = smov [#allocation3]   ;;  %s29_s29 = int_to_ptr.hbm [resolvable:$true] %s28_s29 }
   0x4   :  { %s30_s9 = sshll.u32 %s739_s30, 4  ;;  %s43_s12 = sshll.u32 %s1043_s5, 4  ;;  %s31_s9 = int_to_ptr.vmem [resolvable:$true] %s30_s9  ;;  %s44_s12 = int_to_ptr.hbm [resolvable:$true] %s43_s12 }
   0x5   :  { %s740_s13 = smov 128   ;;  %s741_s14 = smov 8  }
   0x6   :  { %36 = dma.hbm_to_vmem [thread:$0]  %s29_s29, 2048, %s31_s9, [#allocation4], %s740_s13, %s740_s13, %s741_s14  }
   0x7   :  { %s742_s15 = smov [#allocation6]  }
   0x8   :  { %s45_s16 = sshll.u32 %s742_s15, 4  ;;  %s46_s16 = int_to_ptr.vmem [resolvable:$true] %s45_s16 }
   0x9   :  { %51 = dma.hbm_to_vmem [thread:$0]  %s44_s12, 2048, %s46_s16, [#allocation7], %s740_s13, %s740_s13, %s741_s14  }
   0xa   :  { %731 = dma.done.wait [#allocation4], 2048  }
   0xb   :  { %732 = vsyncadd [#allocation4], 4294965248 }
   0xc   :  { %733 = dma.done.wait [#allocation7], 2048  }
   0xd   :  { %734 = vsyncadd [#allocation7], 4294965248  ;;  %v802_v0 = vld [vmem:[#allocation3 + $0x78] sm:$0xff]  ;;  %v804_v1 = vld [vmem:[#allocation3 + $0x70] sm:$0xff]  ;;  %vm106_vm0 = vcmask 1043456   ;;  %vm81_vm1 = vcmask 31744  }
   0xe   :  { %177 = vmatpush.msra.mxu1 %v802_v0  ;;  %218 = vmatpush.msra.mxu3 %v802_v0  ;;  %v808_v2 = vld [vmem:[#allocation3 + $0x68] sm:$0xff]  ;;  %v812_v3 = vld [vmem:[#allocation3 + $0x60] sm:$0xff]  ;;  %v821_v6 = vld [vmem:[#allocation3 + $0x58] sm:$0xff]  ;;  %s585_s5 = sshll.u32 %s1046_s8, 4  ;;  %s744_s17 = smov [#allocation8]   ;;  %s586_s5 = int_to_ptr.hbm [resolvable:$true] %s585_s5 }
   0xf   :  { %v76_v4 = vld [vmem:[%s1040_s2] sm:$0xf]  ;;  %v511_v8 = vld [vmem:[#allocation6 + $0x78] sm:$0xff]  ;;  %v510_v9 = vld [vmem:[#allocation6 + $0x70] sm:$0xff]  ;;  %s569_s18 = sshll.u32 %s744_s17, 4  ;;  %s571_s2 = sshll.u32 %s1045_s7, 4  ;;  %s570_s18 = int_to_ptr.vmem [resolvable:$true] %s569_s18  ;;  %s572_s2 = int_to_ptr.hbm [resolvable:$true] %s571_s2 }
  0x10   :  { %178 = vmatpush.msra.mxu1 %v804_v1  ;;  %219 = vmatpush.msra.mxu3 %v804_v1  ;;  %v68_v5 = vld [vmem:[%s1038_s0] sm:$0xff]  ;;  %v829_v10 = vld [vmem:[#allocation3 + $0x50] sm:$0xff]  ;;  %v509_v11 = vld [vmem:[#allocation6 + $0x68] sm:$0xff] }
  0x11   :  { %601 = vmatpush.msk.msra.mxu0 %vm106_vm0, %v76_v4  ;;  %610 = vmatpush.msk.msra.mxu2 %vm106_vm0, %v76_v4  ;;  %v72_v7 = vld [vmem:[%s1038_s0 + $0x20] sm:$0xff]  ;;  %v834_v12 = vld [vmem:[#allocation3 + $0x48] sm:$0xff]  ;;  %v507_v16 = vld [vmem:[#allocation6 + $0x58] sm:$0xff] }
  0x12   :  { %179 = vmatpush.msra.mxu1 %v808_v2  ;;  %602 = vmatmul.msk.f32.vlgmr.msra.gmra.mxu0 %vm81_vm1, %v68_v5  ;;  %v508_v13 = vld [vmem:[#allocation6 + $0x60] sm:$0xff]  ;;  %v73_v15 = vld [vmem:[%s1038_s0 + $0x28] sm:$0xff]  ;;  %v847_v17 = vld [vmem:[#allocation3 + $0x38] sm:$0xff] }
  0x13   :  { %606 = vmatmul.msk.f32.vlgmr.msra.gmra.mxu2 %vm81_vm1, %v72_v7  ;;  %220 = vmatpush.msra.mxu3 %v808_v2  ;;  %v839_v14 = vld [vmem:[#allocation3 + $0x40] sm:$0xff]  ;;  %v506_v18 = vld [vmem:[#allocation6 + $0x50] sm:$0xff]  ;;  %v505_v20 = vld [vmem:[#allocation6 + $0x48] sm:$0xff] }
  0x14   :  { %180 = vmatpush.msra.mxu1 %v812_v3  ;;  %516 = vmatpush.msrb.mxu2 %v511_v8  ;;  %v852_v19 = vld [vmem:[#allocation3 + $0x30] sm:$0xff]  ;;  %v857_v21 = vld [vmem:[#allocation3 + $0x28] sm:$0xff]  ;;  %v504_v22 = vld [vmem:[#allocation6 + $0x40] sm:$0xff] }
  0x15   :  { %341 = vmatpush.msrb.mxu0 %v802_v0  ;;  %221 = vmatpush.msra.mxu3 %v812_v3  ;;  %v862_v23 = vld [vmem:[#allocation3 + $0x20] sm:$0xff]  ;;  %v74_v24 = vld [vmem:[%s1038_s0 + $0x30] sm:$0xff]  ;;  %v503_v25 = vld [vmem:[#allocation6 + $0x38] sm:$0xff] }
  0x16   :  { %181 = vmatpush.msra.mxu1 %v821_v6  ;;  %517 = vmatpush.msrb.mxu2 %v510_v9  ;;  %v870_v26 = vld [vmem:[#allocation3 + $0x18] sm:$0xff]  ;;  %v502_v27 = vld [vmem:[#allocation6 + $0x30] sm:$0xff]  ;;  %v880_v29 = vld [vmem:[#allocation3 + $0x8] sm:$0xff] }
  0x17   :  { %342 = vmatpush.msrb.mxu0 %v804_v1  ;;  %222 = vmatpush.msra.mxu3 %v821_v6  ;;  %v875_v28 = vld [vmem:[#allocation3 + $0x10] sm:$0xff]  ;;  %v885_v30 = vld [vmem:[#allocation3] sm:$0xff]  ;;  %v501_v32 = vld [vmem:[#allocation6 + $0x28] sm:$0xff] }
  0x18   :  { %182 = vmatpush.msra.mxu1 %v829_v10  ;;  %518 = vmatpush.msrb.mxu2 %v509_v11  ;;  %v66_v31 = vld [vmem:[%s1039_s1] sm:$0xff]  ;;  %v75_v34 = vld [vmem:[%s1038_s0 + $0x38] sm:$0xff]  ;;  %v498_v36 = vld [vmem:[#allocation6 + $0x10] sm:$0xff] }
  0x19   :  { %343 = vmatpush.msrb.mxu0 %v808_v2  ;;  %223 = vmatpush.msra.mxu3 %v829_v10  ;;  %v500_v33 = vld [vmem:[#allocation6 + $0x20] sm:$0xff]  ;;  %v499_v35 = vld [vmem:[#allocation6 + $0x18] sm:$0xff]  ;;  %v497_v37 = vld [vmem:[#allocation6 + $0x8] sm:$0xff] }
  0x1a   :  { %183 = vmatpush.msra.mxu1 %v834_v12  ;;  %519 = vmatpush.msrb.mxu2 %v508_v13  ;;  %v496_v38 = vld [vmem:[#allocation6] sm:$0xff]  ;;  %v69_v39 = vld [vmem:[%s1038_s0 + $0x8] sm:$0xff]  ;;  %v70_v48 = vld [vmem:[%s1038_s0 + $0x10] sm:$0xff] }
  0x1b   :  { %607 = vmatmul.msk.f32.gmra.mxu2 %vm81_vm1, %v73_v15  ;;  %224 = vmatpush.msra.mxu3 %v834_v12  ;;  %v979_v40 = vld [vmem:[%s1042_s4] ss:$0 sm:$0xff]  ;;  %v71_v59 = vld [vmem:[%s1038_s0 + $0x18] sm:$0xff]  ;;  %s743_s0 = smov [#allocation9]  }
  0x1c   :  { %184 = vmatpush.msra.mxu1 %v839_v14  ;;  %520 = vmatpush.msrb.mxu2 %v507_v16  ;;  %v1008_v53 = vld [vmem:[%s1044_s6] ss:$0 sm:$0xff]  ;;  %s583_s6 = sshll.u32 %s743_s0, 4  ;;  %s584_s6 = int_to_ptr.vmem [resolvable:$true] %s583_s6 }
  0x1d   :  { %344 = vmatpush.msrb.mxu0 %v812_v3  ;;  %225 = vmatpush.msra.mxu3 %v839_v14 }
  0x1e   :  { %185 = vmatpush.msra.mxu1 %v847_v17  ;;  %521 = vmatpush.msrb.mxu2 %v506_v18 }
  0x1f   :  { %345 = vmatpush.msrb.mxu0 %v821_v6  ;;  %226 = vmatpush.msra.mxu3 %v847_v17 }
  0x20   :  { %186 = vmatpush.msra.mxu1 %v852_v19  ;;  %522 = vmatpush.msrb.mxu2 %v505_v20 }
  0x21   :  { %346 = vmatpush.msrb.mxu0 %v829_v10  ;;  %227 = vmatpush.msra.mxu3 %v852_v19 }
  0x22   :  { %187 = vmatpush.msra.mxu1 %v857_v21  ;;  %523 = vmatpush.msrb.mxu2 %v504_v22 }
  0x23   :  { %608 = vmatmul.msk.f32.gmra.mxu2 %vm81_vm1, %v74_v24  ;;  %228 = vmatpush.msra.mxu3 %v857_v21 }
  0x24   :  { %188 = vmatpush.msra.mxu1 %v862_v23  ;;  %524 = vmatpush.msrb.mxu2 %v503_v25 }
  0x25   :  { %347 = vmatpush.msrb.mxu0 %v834_v12  ;;  %229 = vmatpush.msra.mxu3 %v862_v23 }
  0x26   :  { %189 = vmatpush.msra.mxu1 %v870_v26  ;;  %525 = vmatpush.msrb.mxu2 %v502_v27 }
  0x27   :  { %348 = vmatpush.msrb.mxu0 %v839_v14  ;;  %230 = vmatpush.msra.mxu3 %v870_v26 }
  0x28   :  { %190 = vmatpush.msra.mxu1 %v875_v28  ;;  %526 = vmatpush.msrb.mxu2 %v501_v32 }
  0x29   :  { %349 = vmatpush.msrb.mxu0 %v847_v17  ;;  %231 = vmatpush.msra.mxu3 %v875_v28 }
  0x2a   :  { %191 = vmatpush.msra.mxu1 %v880_v29  ;;  %527 = vmatpush.msrb.mxu2 %v500_v33 }
  0x2b   :  { %350 = vmatpush.msrb.mxu0 %v852_v19  ;;  %232 = vmatpush.msra.mxu3 %v880_v29 }
  0x2c   :  { %192 = vmatpush.msra.mxu1 %v885_v30  ;;  %609 = vmatmul.msk.f32.gmra.mxu2 %vm81_vm1, %v75_v34 }
  0x2d   :  { %193 = vmatmul.f32.vlgmr.msra.gmra.mxu1 %v66_v31  ;;  %351 = vmatpush.msrb.mxu0 %v857_v21 }
  0x2e   :  { %300 = vmatpush.msrb.mxu1 %v802_v0  ;;  %233 = vmatpush.msra.mxu3 %v885_v30 }
  0x2f   :  { %352 = vmatpush.msrb.mxu0 %v862_v23  ;;  %528 = vmatpush.msrb.mxu2 %v499_v35 }
  0x30   :  { %259 = vmatpush.msrb.mxu3 %v802_v0  ;;  %301 = vmatpush.msrb.mxu1 %v804_v1 }
  0x31   :  { %353 = vmatpush.msrb.mxu0 %v870_v26  ;;  %529 = vmatpush.msrb.mxu2 %v498_v36 }
  0x32   :  { %260 = vmatpush.msrb.mxu3 %v804_v1  ;;  %302 = vmatpush.msrb.mxu1 %v808_v2 }
  0x33   :  { %354 = vmatpush.msrb.mxu0 %v875_v28  ;;  %530 = vmatpush.msrb.mxu2 %v497_v37 }
  0x34   :  { %261 = vmatpush.msrb.mxu3 %v808_v2  ;;  %303 = vmatpush.msrb.mxu1 %v812_v3 }
  0x35   :  { %355 = vmatpush.msrb.mxu0 %v880_v29  ;;  %531 = vmatpush.msrb.mxu2 %v496_v38 }
  0x36   :  { %262 = vmatpush.msrb.mxu3 %v812_v3  ;;  %304 = vmatpush.msrb.mxu1 %v821_v6 }
  0x37   :  { %356 = vmatpush.msrb.mxu0 %v885_v30 }
  0x38   :  { %263 = vmatpush.msrb.mxu3 %v821_v6  ;;  %305 = vmatpush.msrb.mxu1 %v829_v10 }
  0x39   :  { %423 = vmatpush.msra.mxu0 %v802_v0 }
  0x3a   :  { %264 = vmatpush.msrb.mxu3 %v829_v10  ;;  %306 = vmatpush.msrb.mxu1 %v834_v12 }
  0x3b   :  { %424 = vmatpush.msra.mxu0 %v804_v1 }
  0x3c   :  { %265 = vmatpush.msrb.mxu3 %v834_v12  ;;  %307 = vmatpush.msrb.mxu1 %v839_v14 }
  0x3d   :  { %425 = vmatpush.msra.mxu0 %v808_v2 }
  0x3e   :  { %266 = vmatpush.msrb.mxu3 %v839_v14  ;;  %308 = vmatpush.msrb.mxu1 %v847_v17 }
  0x3f   :  { %426 = vmatpush.msra.mxu0 %v812_v3 }
  0x40   :  { %267 = vmatpush.msrb.mxu3 %v847_v17  ;;  %309 = vmatpush.msrb.mxu1 %v852_v19 }
  0x41   :  { %427 = vmatpush.msra.mxu0 %v821_v6 }
  0x42   :  { %268 = vmatpush.msrb.mxu3 %v852_v19  ;;  %310 = vmatpush.msrb.mxu1 %v857_v21 }
  0x43   :  { %428 = vmatpush.msra.mxu0 %v829_v10 }
  0x44   :  { %269 = vmatpush.msrb.mxu3 %v857_v21  ;;  %311 = vmatpush.msrb.mxu1 %v862_v23 }
  0x45   :  { %429 = vmatpush.msra.mxu0 %v834_v12 }
  0x46   :  { %270 = vmatpush.msrb.mxu3 %v862_v23  ;;  %312 = vmatpush.msrb.mxu1 %v870_v26 }
  0x47   :  { %430 = vmatpush.msra.mxu0 %v839_v14 }
  0x48   :  { %271 = vmatpush.msrb.mxu3 %v870_v26  ;;  %313 = vmatpush.msrb.mxu1 %v875_v28 }
  0x49   :  { %431 = vmatpush.msra.mxu0 %v847_v17 }
  0x4a   :  { %272 = vmatpush.msrb.mxu3 %v875_v28  ;;  %314 = vmatpush.msrb.mxu1 %v880_v29 }
  0x4b   :  { %432 = vmatpush.msra.mxu0 %v852_v19 }
  0x4c   :  { %273 = vmatpush.msrb.mxu3 %v880_v29  ;;  %315 = vmatpush.msrb.mxu1 %v885_v30 }
  0x4d   :  { %433 = vmatpush.msra.mxu0 %v857_v21 }
  0x4e   :  { %464 = vmatpush.msra.mxu1 %v802_v0  ;;  %274 = vmatpush.msrb.mxu3 %v885_v30 }
  0x4f   :  { %434 = vmatpush.msra.mxu0 %v862_v23 }
  0x50   :  { %465 = vmatpush.msra.mxu1 %v804_v1  ;;  %603 = vmatmul.msk.f32.gmra.mxu0 %vm81_vm1, %v69_v39 }
  0x51   :  { %435 = vmatpush.msra.mxu0 %v870_v26 }
  0x52   :  { %466 = vmatpush.msra.mxu1 %v808_v2 }
  0x53   :  { %436 = vmatpush.msra.mxu0 %v875_v28 }
  0x54   :  { %467 = vmatpush.msra.mxu1 %v812_v3 }
  0x55   :  { %437 = vmatpush.msra.mxu0 %v880_v29 }
  0x56   :  { %468 = vmatpush.msra.mxu1 %v821_v6 }
  0x57   :  { %438 = vmatpush.msra.mxu0 %v885_v30 }
  0x58   :  { %469 = vmatpush.msra.mxu1 %v829_v10  ;;  %604 = vmatmul.msk.f32.gmra.mxu0 %vm81_vm1, %v70_v48 }
  0x5a   :  { %470 = vmatpush.msra.mxu1 %v834_v12 }
  0x5c   :  { %471 = vmatpush.msra.mxu1 %v839_v14 }
  0x5e   :  { %472 = vmatpush.msra.mxu1 %v847_v17 }
  0x60   :  { %473 = vmatpush.msra.mxu1 %v852_v19  ;;  %605 = vmatmul.msk.f32.gmra.mxu0 %vm81_vm1, %v71_v59 }
  0x62   :  { %474 = vmatpush.msra.mxu1 %v857_v21 }
  0x64   :  { %475 = vmatpush.msra.mxu1 %v862_v23 }
  0x66   :  { %476 = vmatpush.msra.mxu1 %v870_v26 }
  0x68   :  { %477 = vmatpush.msra.mxu1 %v875_v28 }
  0x6a   :  { %478 = vmatpush.msra.mxu1 %v880_v29 }
  0x6c   :  { %479 = vmatpush.msra.mxu1 %v885_v30 }
  0x8f   :  { %v127_v41 = vpop.f32.mrf.mxu0 }
  0x90   :  { %v128_v42 = vadd.f32 %v979_v40, %v127_v41 }
  0x96   :  { %v139_v46 = vpop.f32.mrf.mxu2 }
  0x9e   :  { %v142_v47 = vpop.f32.mrf.mxu2 }
  0x9f   :  { %v143_v16 = vadd.f32 %v979_v40, %v142_v47 }
  0xa6   :  { %v145_v49 = vpop.f32.mrf.mxu2 }
  0xa7   :  { %v146_v22 = vadd.f32 %v979_v40, %v145_v49 }
  0xaa   :  { %v194_v43 = vpop.f32.mrf.mxu1 }
  0xab   :  { %v197_v44 = vadd.f32 %v194_v43, %v128_v42 }
  0xad   :  { %619 = vtanh.f32 %v197_v44 }
  0xaf   :  { %v1002_v50 = vpop.f32.mrf.mxu2 }
  0xb3   :  { %v620_v45 = vpop.eup %619 }
  0xb4   :  { %234 = vmatmul.f32.vlgmr.msra.gmra.mxu3 %v620_v45  ;;  %532 = vmatmul.f32.vlgmr.msrb.gmra.mxu2 %v620_v45 }
  0xb5   :  { %382 = vmatpush.msra.mxu3 %v802_v0 }
  0xb7   :  { %383 = vmatpush.msra.mxu3 %v804_v1 }
  0xb9   :  { %384 = vmatpush.msra.mxu3 %v808_v2 }
  0xbb   :  { %385 = vmatpush.msra.mxu3 %v812_v3 }
  0xbd   :  { %386 = vmatpush.msra.mxu3 %v821_v6 }
  0xbf   :  { %387 = vmatpush.msra.mxu3 %v829_v10  ;;  %v140_v10 = vadd.f32 %v979_v40, %v139_v46 }
  0xc1   :  { %388 = vmatpush.msra.mxu3 %v834_v12 }
  0xc3   :  { %389 = vmatpush.msra.mxu3 %v839_v14 }
  0xc5   :  { %390 = vmatpush.msra.mxu3 %v847_v17 }
  0xc7   :  { %391 = vmatpush.msra.mxu3 %v852_v19 }
  0xc9   :  { %392 = vmatpush.msra.mxu3 %v857_v21 }
  0xcb   :  { %393 = vmatpush.msra.mxu3 %v862_v23 }
  0xcd   :  { %394 = vmatpush.msra.mxu3 %v870_v26  ;;  %v130_v51 = vpop.f32.mrf.mxu0 }
  0xce   :  { %v131_v52 = vadd.f32 %v979_v40, %v130_v51 }
  0xcf   :  { %395 = vmatpush.msra.mxu3 %v875_v28  ;;  %v149_v28 = vadd.f32 %v979_v40, %v1002_v50 }
  0xd1   :  { %396 = vmatpush.msra.mxu3 %v880_v29 }
  0xd3   :  { %397 = vmatpush.msra.mxu3 %v885_v30 }
  0xd5   :  { %v133_v60 = vpop.f32.mrf.mxu0 }
  0xd6   :  { %v134_v61 = vadd.f32 %v979_v40, %v133_v60 }
  0xdd   :  { %v136_v3 = vpop.f32.mrf.mxu0 }
  0xde   :  { %v137_v4 = vadd.f32 %v979_v40, %v136_v3 }
 0x137   :  { %v235_v54 = vpop.f32.mrf.mxu3  ;;  %v533_v55 = vpop.f32.mrf.mxu2 }
 0x138   :  { %v238_v56 = vadd.f32 %v235_v54, %v131_v52  ;;  %v534_v57 = vadd.f32 %v1008_v53, %v533_v55 }
 0x13a   :  { %621 = vtanh.f32 %v238_v56  ;;  %557 = vst [vmem:[#allocation8] sm:$0xff] %v534_v57 }
 0x140   :  { %v622_v58 = vpop.eup %621 }
 0x141   :  { %275 = vmatmul.f32.vlgmr.msrb.gmra.mxu3 %v622_v58  ;;  %535 = vmatmul.f32.gmra.mxu2 %v622_v58 }
 0x1c4   :  { %v276_v62 = vpop.f32.mrf.mxu3  ;;  %v536_v63 = vpop.f32.mrf.mxu2 }
 0x1c5   :  { %v279_v0 = vadd.f32 %v276_v62, %v134_v61  ;;  %v537_v1 = vadd.f32 %v1008_v53, %v536_v63 }
 0x1c7   :  { %623 = vtanh.f32 %v279_v0  ;;  %558 = vst [vmem:[#allocation8 + $0x8] sm:$0xff] %v537_v1 }
 0x1cd   :  { %v624_v2 = vpop.eup %623 }
 0x1ce   :  { %316 = vmatmul.f32.vlgmr.msrb.gmra.mxu1 %v624_v2  ;;  %538 = vmatmul.f32.gmra.mxu2 %v624_v2 }
 0x24b   :  { %v317_v5 = vpop.f32.mrf.mxu1 }
 0x24c   :  { %v320_v6 = vadd.f32 %v317_v5, %v137_v4 }
 0x24e   :  { %625 = vtanh.f32 %v320_v6 }
 0x251   :  { %v539_v7 = vpop.f32.mrf.mxu2 }
 0x252   :  { %v540_v8 = vadd.f32 %v1008_v53, %v539_v7 }
 0x254   :  { %v626_v9 = vpop.eup %625  ;;  %559 = vst [vmem:[#allocation8 + $0x10] sm:$0xff] %v540_v8 }
 0x255   :  { %357 = vmatmul.f32.vlgmr.msrb.gmra.mxu0 %v626_v9  ;;  %541 = vmatmul.f32.gmra.mxu2 %v626_v9 }
 0x2d2   :  { %v358_v11 = vpop.f32.mrf.mxu0 }
 0x2d3   :  { %v361_v12 = vadd.f32 %v358_v11, %v140_v10 }
 0x2d5   :  { %627 = vtanh.f32 %v361_v12 }
 0x2d8   :  { %v542_v13 = vpop.f32.mrf.mxu2 }
 0x2d9   :  { %v543_v14 = vadd.f32 %v1008_v53, %v542_v13 }
 0x2db   :  { %v628_v15 = vpop.eup %627  ;;  %560 = vst [vmem:[#allocation8 + $0x18] sm:$0xff] %v543_v14 }
 0x2dc   :  { %398 = vmatmul.f32.vlgmr.msra.gmra.mxu3 %v628_v15  ;;  %544 = vmatmul.f32.gmra.mxu2 %v628_v15 }
 0x35f   :  { %v399_v17 = vpop.f32.mrf.mxu3  ;;  %v545_v18 = vpop.f32.mrf.mxu2 }
 0x360   :  { %v402_v19 = vadd.f32 %v399_v17, %v143_v16  ;;  %v546_v20 = vadd.f32 %v1008_v53, %v545_v18 }
 0x362   :  { %629 = vtanh.f32 %v402_v19  ;;  %561 = vst [vmem:[#allocation8 + $0x20] sm:$0xff] %v546_v20 }
 0x368   :  { %v630_v21 = vpop.eup %629 }
 0x369   :  { %439 = vmatmul.f32.vlgmr.msra.gmra.mxu0 %v630_v21  ;;  %547 = vmatmul.f32.gmra.mxu2 %v630_v21 }
 0x3e6   :  { %v440_v23 = vpop.f32.mrf.mxu0 }
 0x3e7   :  { %v443_v24 = vadd.f32 %v440_v23, %v146_v22 }
 0x3e9   :  { %631 = vtanh.f32 %v443_v24 }
 0x3ec   :  { %v548_v25 = vpop.f32.mrf.mxu2 }
 0x3ed   :  { %v549_v26 = vadd.f32 %v1008_v53, %v548_v25 }
 0x3ef   :  { %v632_v27 = vpop.eup %631  ;;  %562 = vst [vmem:[#allocation8 + $0x28] sm:$0xff] %v549_v26 }
 0x3f0   :  { %480 = vmatmul.f32.vlgmr.msra.gmra.mxu1 %v632_v27  ;;  %550 = vmatmul.f32.gmra.mxu2 %v632_v27 }
 0x46d   :  { %v481_v29 = vpop.f32.mrf.mxu1 }
 0x46e   :  { %v484_v30 = vadd.f32 %v481_v29, %v149_v28 }
 0x470   :  { %633 = vtanh.f32 %v484_v30 }
 0x473   :  { %v551_v31 = vpop.f32.mrf.mxu2 }
 0x474   :  { %v552_v32 = vadd.f32 %v1008_v53, %v551_v31 }
 0x476   :  { %v634_v33 = vpop.eup %633  ;;  %563 = vst [vmem:[#allocation8 + $0x30] sm:$0xff] %v552_v32 }
 0x477   :  { %487 = vst [vmem:[#allocation9] sm:$0xff] %v634_v33  ;;  %553 = vmatmul.f32.gmra.mxu2 %v634_v33 }
 0x478   :  { %588 = dma.vmem_to_hbm [thread:$0]  %s584_s6, 128, %s586_s5, [#allocation10]  }
 0x4fa   :  { %v554_v34 = vpop.f32.mrf.mxu2 }
 0x4fb   :  { %v555_v35 = vadd.f32 %v1008_v53, %v554_v34 }
 0x4fd   :  { %564 = vst [vmem:[#allocation8 + $0x38] sm:$0xff] %v555_v35 }
 0x4fe   :  { %577 = dma.vmem_to_hbm [thread:$0]  %s570_s18, 1024, %s572_s2, [#allocation5], %s740_s13, %s740_s13, %s741_s14  }
 0x4ff   :  { %735 = dma.done.wait [#allocation5], 1024  }
 0x500   :  { %736 = vsyncadd [#allocation5], 4294966272 }
 0x501   :  { %737 = dma.done.wait [#allocation10], 128  }
 0x502   :  { %738 = vsyncadd [#allocation10], 4294967168 }
 0x503   :  { %597 = vsyncpa [#allocation4], 1 }
 0x504   :  { %598 = vsyncpa [#allocation7], 1 }
 0x505   :  { %599 = vsyncpa [#allocation5], 1 }
 0x506   :  { %600 = vsyncpa [#allocation10], 1 }

</bundles_post_ra>
